<compile_context>
chip_gen: v7x
topology: tpu7x:2x2x1
jax: 0.10.0
libtpu: 0.0.40
codegen_flags: <defaults>
</compile_context>

<pallas_src>
import functools

import jax
import jax.numpy as jnp
from jax.experimental import pallas as pl
from jax.experimental.pallas import tpu as pltpu

EPS = 1e-5

# ----------------------------------------------------------------------------
# Generation-aware VMEM budget + single-buffering probe
# ----------------------------------------------------------------------------
_VMEM_LIMIT = None
_SINGLE_BUFFER_OK = None


def _vmem_limit_bytes():
    """~75% of physical VMEM (v5e/v6e: 128 MiB, v7x: 64 MiB), with headroom."""
    global _VMEM_LIMIT
    if _VMEM_LIMIT is None:
        try:
            cap = int(pltpu.get_tpu_info().vmem_capacity_bytes)
        except Exception:
            cap = 64 * 1024 * 1024
        _VMEM_LIMIT = max(32 * 1024 * 1024, (cap * 3) // 4)
    return _VMEM_LIMIT


def _probe_kernel(a_ref, b_ref, o_ref):
    o_ref[...] = a_ref[...] + b_ref[...]


def _single_buffer_ok():
    """Probe once whether BlockSpec(pipeline_mode=pl.Buffered(1)) works here."""
    global _SINGLE_BUFFER_OK
    if _SINGLE_BUFFER_OK is not None:
        return _SINGLE_BUFFER_OK
    try:
        fn = pl.pallas_call(
            _probe_kernel,
            out_shape=jax.ShapeDtypeStruct((16, 128), jnp.float32),
            grid=(2,),
            in_specs=[
                pl.BlockSpec((8, 128), lambda i: (i, 0),
                             pipeline_mode=pl.Buffered(buffer_count=1)),
                pl.BlockSpec((8, 128), lambda i: (0, 0),
                             pipeline_mode=pl.Buffered(buffer_count=1)),
            ],
            out_specs=pl.BlockSpec((8, 128), lambda i: (i, 0)),
        )
        out = jax.block_until_ready(
            fn(jnp.zeros((16, 128), jnp.float32),
               jnp.ones((8, 128), jnp.float32)))
        _SINGLE_BUFFER_OK = bool(jnp.all(out == 1.0))
    except Exception:
        _SINGLE_BUFFER_OK = False
    return _SINGLE_BUFFER_OK


def _spec(shape, index_map=None, single=False):
    """BlockSpec helper; single=True -> 1-deep buffering for (near-)invariant
    operands (halves their VMEM footprint) when the running JAX supports it."""
    if index_map is None:
        zeros = (0,) * len(shape)
        index_map = lambda *args, _z=zeros: _z
    if single and _single_buffer_ok():
        return pl.BlockSpec(shape, index_map,
                            pipeline_mode=pl.Buffered(buffer_count=1))
    return pl.BlockSpec(shape, index_map)


# ----------------------------------------------------------------------------
# Tiling helpers
# ----------------------------------------------------------------------------
def _seq_tile(T, n_heads):
    cands = [t for t in (512, 256, 128) if T % t == 0 and T > t]
    for t in cands:  # largest first; keep (H, tq, T) f32 scores modest
        if n_heads * t * T * 4 <= 32 * 1024 * 1024:
            return t
    return cands[-1] if cands else T


def _vocab_tile(V):
    for t in (4096, 2048, 1024, 512, 256, 128):
        if V % t == 0 and V > t:
            return t
    return V


def _row_tile(R):
    for t in (512, 256, 128, 64, 32, 16, 8):
        if R % t == 0 and R > t:
            return t
    return R


# ----------------------------------------------------------------------------
# In-kernel helpers
# ----------------------------------------------------------------------------
def _layer_norm(x, w, b):
    # x: (rows, C) f32, w/b: (1, C) f32
    mu = jnp.mean(x, axis=-1, keepdims=True)
    var = jnp.mean((x - mu) ** 2, axis=-1, keepdims=True)
    return (x - mu) * jax.lax.rsqrt(var + EPS) * w + b


# ----------------------------------------------------------------------------
# Transformer Block kernel
# ----------------------------------------------------------------------------
def block_kernel(xf_ref,
                 ln1w_ref, ln1b_ref,
                 wq_ref, wk_ref, wv_ref,
                 wproj_ref, bproj_ref,
                 ln2w_ref, ln2b_ref,
                 w1_ref, b1_ref, w2_ref, b2_ref,
                 out_ref,
                 kv_ref, q_scr, oc_scr,
                 *, n_heads):
    qi = pl.program_id(1)
    T, C = xf_ref.shape[1], xf_ref.shape[2]
    tq = out_ref.shape[1]
    H = n_heads
    hs = C // H

    # --- once per batch element: LN1 over full sequence -> K, V (head-major) --
    @pl.when(qi == 0)
    def _():
        xln_full = _layer_norm(xf_ref[0].astype(jnp.float32),
                               ln1w_ref[...], ln1b_ref[...]).astype(jnp.bfloat16)
        k_full = jnp.dot(xln_full, wk_ref[...],
                         preferred_element_type=jnp.float32)           # (T, C)
        v_full = jnp.dot(xln_full, wv_ref[...],
                         preferred_element_type=jnp.float32)           # (T, C)
        for h in range(H):
            sl = slice(h * hs, (h + 1) * hs)
            kv_ref[0, h] = k_full[:, sl].astype(jnp.bfloat16)          # (T, hs)
            kv_ref[1, h] = v_full[:, sl].astype(jnp.bfloat16)

    # --- this q-tile ----------------------------------------------------------
    q0 = pl.multiple_of(qi * tq, tq)
    x_tile = xf_ref[0, pl.ds(q0, tq), :].astype(jnp.float32)           # (tq, C)
    xln_tile = _layer_norm(x_tile, ln1w_ref[...],
                           ln1b_ref[...]).astype(jnp.bfloat16)

    # PyTorch `Head` scales scores by n_embed ** -0.5 (C, not head_size);
    # fold the scale into Q before the bf16 cast.
    scale = jnp.float32(C) ** -0.5
    q_full = jnp.dot(xln_tile, wq_ref[...],
                     preferred_element_type=jnp.float32) * scale       # (tq, C)
    for h in range(H):
        sl = slice(h * hs, (h + 1) * hs)
        q_scr[h] = q_full[:, sl].astype(jnp.bfloat16)                  # (tq, hs)

    # Head-batched attention (leading batch dim -> canonical MXU form).
    s = jnp.einsum("hqd,hkd->hqk", q_scr[...], kv_ref[0],
                   preferred_element_type=jnp.float32)                 # (H, tq, T)
    row = q0 + jax.lax.broadcasted_iota(jnp.int32, (tq, T), 0)
    col = jax.lax.broadcasted_iota(jnp.int32, (tq, T), 1)
    s = jnp.where((col <= row)[None, :, :], s, jnp.float32(-1e30))
    s = s - jnp.max(s, axis=-1, keepdims=True)
    p = jnp.exp(s)
    p = p * pl.reciprocal(jnp.sum(p, axis=-1, keepdims=True), approx=True)
    o = jnp.einsum("hqk,hkd->hqd", p.astype(jnp.bfloat16), kv_ref[1],
                   preferred_element_type=jnp.float32)                 # (H, tq, hs)
    # TODO(synk): attention / proj / FFN dropout not implemented (inference mode).

    for h in range(H):                                                 # concat heads
        oc_scr[:, h * hs:(h + 1) * hs] = o[h].astype(jnp.bfloat16)

    # Output projection as ONE full-contraction-width matmul + residual + bias.
    x1 = x_tile + bproj_ref[...] + jnp.dot(oc_scr[...], wproj_ref[...],
                                           preferred_element_type=jnp.float32)

    # --- LN2 + FFN + residual -------------------------------------------------
    yln = _layer_norm(x1, ln2w_ref[...], ln2b_ref[...]).astype(jnp.bfloat16)
    hdn = jnp.dot(yln, w1_ref[...], preferred_element_type=jnp.float32) + b1_ref[...]
    hdn = jnp.maximum(hdn, 0.0).astype(jnp.bfloat16)
    ffn = jnp.dot(hdn, w2_ref[...], preferred_element_type=jnp.float32) + b2_ref[...]
    out_ref[0] = (x1 + ffn).astype(out_ref.dtype)


def run_block(x, p, n_heads, tq):
    B, T, C = x.shape
    assert C % n_heads == 0
    hs = C // n_heads
    grid = (B, T // tq)
    kernel = functools.partial(block_kernel, n_heads=n_heads)
    in_specs = [
        _spec((1, T, C), lambda b, qi: (b, 0, 0), single=True),        # full-seq x
        _spec((1, C), single=True), _spec((1, C), single=True),        # ln1 w, b
        _spec((C, C), single=True),                                    # Wq (bf16)
        _spec((C, C), single=True),                                    # Wk (bf16)
        _spec((C, C), single=True),                                    # Wv (bf16)
        _spec((C, C), single=True), _spec((1, C), single=True),        # proj W, b
        _spec((1, C), single=True), _spec((1, C), single=True),        # ln2 w, b
        _spec((C, 4 * C), single=True), _spec((1, 4 * C), single=True),  # ffn W1, b1
        _spec((4 * C, C), single=True), _spec((1, C), single=True),      # ffn W2, b2
    ]
    return pl.pallas_call(
        kernel,
        out_shape=jax.ShapeDtypeStruct((B, T, C), x.dtype),
        grid=grid,
        in_specs=in_specs,
        out_specs=pl.BlockSpec((1, tq, C), lambda b, qi: (b, qi, 0)),
        scratch_shapes=[
            pltpu.VMEM((2, n_heads, T, hs), jnp.bfloat16),   # K, V (head-major)
            pltpu.VMEM((n_heads, tq, hs), jnp.bfloat16),     # Q for this tile
            pltpu.VMEM((tq, C), jnp.bfloat16),               # concat(head outputs)
        ],
        compiler_params=pltpu.CompilerParams(
            dimension_semantics=("parallel", "arbitrary"),
            vmem_limit_bytes=_vmem_limit_bytes()),
    )(x, p["ln1_w"], p["ln1_b"], p["wq"], p["wk"], p["wv"],
      p["w_proj"], p["b_proj"], p["ln2_w"], p["ln2_b"],
      p["w1"], p["b1"], p["w2"], p["b2"])


# ----------------------------------------------------------------------------
# Final LayerNorm + lm_head kernel (rows = flattened (B, T))
# ----------------------------------------------------------------------------
def final_kernel(x_ref, lnw_ref, lnb_ref, wlm_ref, blm_ref, out_ref):
    xln = _layer_norm(x_ref[...].astype(jnp.float32),
                      lnw_ref[...], lnb_ref[...]).astype(jnp.bfloat16)
    out_ref[...] = (jnp.dot(xln, wlm_ref[...],
                            preferred_element_type=jnp.float32)
                    + blm_ref[...]).astype(out_ref.dtype)


def run_final(x, params, tv, tr):
    B, T, C = x.shape
    V = params["w_lm"].shape[1]
    R = B * T
    xr = x.reshape(R, C)
    # vocab OUTER, rows inner: the (C, tv) lm_head weight tile is streamed from
    # HBM exactly once (reused across all batch/seq rows).
    grid = (V // tv, R // tr)
    in_specs = [
        pl.BlockSpec((tr, C), lambda vi, ri: (ri, 0)),
        _spec((1, C), single=True), _spec((1, C), single=True),
        pl.BlockSpec((C, tv), lambda vi, ri: (0, vi)),        # lm_head weight tile
        pl.BlockSpec((1, tv), lambda vi, ri: (0, vi)),        # lm_head bias tile
    ]
    out = pl.pallas_call(
        final_kernel,
        out_shape=jax.ShapeDtypeStruct((R, V), jnp.float32),
        grid=grid,
        in_specs=in_specs,
        out_specs=pl.BlockSpec((tr, tv), lambda vi, ri: (ri, vi)),
        compiler_params=pltpu.CompilerParams(
            dimension_semantics=("parallel", "parallel"),
            vmem_limit_bytes=_vmem_limit_bytes()),
    )(xr, params["lnf_w"], params["lnf_b"], params["w_lm"], params["b_lm"])
    return out.reshape(B, T, V)


# ----------------------------------------------------------------------------
# Full forward
# ----------------------------------------------------------------------------
def transformer_forward(idx, params, seq_tile=None):
    """idx: (B, T) int32 token ids -> logits (B, T, vocab_size)."""
    B, T = idx.shape
    tok_emb = jnp.take(params["tok_table"], idx, axis=0)               # (B, T, C)
    x = tok_emb + params["pos_table"][:T][None, :, :]

    H = params["n_heads"]
    tq = seq_tile if seq_tile is not None else _seq_tile(T, H)
    assert T % tq == 0
    for blk in params["blocks"]:
        x = run_block(x, blk, H, tq)

    V = params["w_lm"].shape[1]
    return run_final(x, params, _vocab_tile(V), _row_tile(B * T))


# ----------------------------------------------------------------------------
# Reference (pure JAX, f32) for correctness check
# ----------------------------------------------------------------------------
def _ln_ref(x, w, b):
    mu = jnp.mean(x, axis=-1, keepdims=True)
    var = jnp.mean((x - mu) ** 2, axis=-1, keepdims=True)
    return (x - mu) * jax.lax.rsqrt(var + EPS) * w + b


def reference_forward(idx, params):
    T = idx.shape[1]
    x = jnp.take(params["tok_table"], idx, axis=0) + params["pos_table"][:T][None]
    H = params["n_heads"]
    for p in params["blocks"]:
        C = x.shape[-1]
        hs = C // H
        xln = _ln_ref(x, p["ln1_w"], p["ln1_b"])
        q = xln @ p["wq"].astype(jnp.float32)
        k = xln @ p["wk"].astype(jnp.float32)
        v = xln @ p["wv"].astype(jnp.float32)
        scale = C ** -0.5
        mask = jnp.tril(jnp.ones((T, T), bool))
        heads = []
        for h in range(H):
            sl = slice(h * hs, (h + 1) * hs)
            wei = jnp.einsum("btd,bsd->bts", q[..., sl], k[..., sl]) * scale
            wei = jnp.where(mask, wei, -jnp.inf)
            wei = jax.nn.softmax(wei, axis=-1)
            heads.append(jnp.einsum("bts,bsd->btd", wei, v[..., sl]))
        attn = jnp.concatenate(heads, axis=-1)
        x = x + attn @ p["w_proj"].astype(jnp.float32) + p["b_proj"]
        yln = _ln_ref(x, p["ln2_w"], p["ln2_b"])
        x = x + (jnp.maximum(yln @ p["w1"].astype(jnp.float32) + p["b1"], 0.0)
                 @ p["w2"].astype(jnp.float32) + p["b2"])
    xln = _ln_ref(x, params["lnf_w"], params["lnf_b"])
    return xln @ params["w_lm"].astype(jnp.float32) + params["b_lm"]


# ----------------------------------------------------------------------------
# Deterministic parameter init (matmul weights stored bf16 for the kernel)
# ----------------------------------------------------------------------------
def init_params(key, vocab_size, n_embed, block_size, n_layers, n_heads):
    C = n_embed
    ks = iter(jax.random.split(key, 8 + 10 * n_layers))

    def nrm(shape, s=0.02):
        return jax.random.normal(next(ks), shape, jnp.float32) * s

    params = {
        "n_heads": n_heads,
        "tok_table": nrm((vocab_size, C)),
        "pos_table": nrm((block_size, C)),
        "lnf_w": jnp.ones((1, C), jnp.float32),
        "lnf_b": jnp.zeros((1, C), jnp.float32),
        "w_lm": nrm((C, vocab_size)).astype(jnp.bfloat16),
        "b_lm": nrm((1, vocab_size)),
        "blocks": [],
    }
    for _ in range(n_layers):
        params["blocks"].append({
            "ln1_w": jnp.ones((1, C), jnp.float32),
            "ln1_b": jnp.zeros((1, C), jnp.float32),
            # columns [h*hs:(h+1)*hs] of each weight belong to head h
            "wq": nrm((C, C)).astype(jnp.bfloat16),
            "wk": nrm((C, C)).astype(jnp.bfloat16),
            "wv": nrm((C, C)).astype(jnp.bfloat16),
            "w_proj": nrm((C, C)).astype(jnp.bfloat16),
            "b_proj": nrm((1, C)),
            "ln2_w": jnp.ones((1, C), jnp.float32),
            "ln2_b": jnp.zeros((1, C), jnp.float32),
            "w1": nrm((C, 4 * C)).astype(jnp.bfloat16),
            "b1": nrm((1, 4 * C)),
            "w2": nrm((4 * C, C)).astype(jnp.bfloat16),
            "b2": nrm((1, C)),
        })
    return params


# ----------------------------------------------------------------------------
if __name__ == "__main__":
    # Small shapes, chosen so that the sequence tiling (tq < T), row tiling
    # (tr < B*T) and vocab tiling (tv < V) code paths are all exercised.
    vocab_size, n_embed, block_size, n_layers, n_heads = 256, 32, 16, 2, 4
    B, T = 2, 16
    seq_tile = 8   # 2 q-tiles per batch element

    key = jax.random.PRNGKey(0)
    kp, ki = jax.random.split(key)
    params = init_params(kp, vocab_size, n_embed, block_size, n_layers, n_heads)
    idx = jax.random.randint(ki, (B, T), 0, vocab_size, dtype=jnp.int32)

    logits = transformer_forward(idx, params, seq_tile=seq_tile)
    logits = jax.block_until_ready(logits)

    ref = reference_forward(idx, params)
    assert logits.shape == (B, T, vocab_size)
    # Tolerance covers bf16 matmul inputs + approximate reciprocal in softmax.
    assert jnp.allclose(logits, ref, atol=2e-2, rtol=2e-2), "mismatch vs JAX reference"

    print("KERNEL_OK")
</pallas_src>

<mosaic_0001>
module attributes {stable_mosaic.version = 11 : i64} {
  func.func @_probe_kernel(%arg0: i32, %arg1: memref<8x128xf32, #tpu.memory_space<vmem>>, %arg2: memref<8x128xf32, #tpu.memory_space<vmem>>, %arg3: memref<8x128xf32, #tpu.memory_space<vmem>>) attributes {dimension_semantics = [#tpu.dimension_semantics<arbitrary>], iteration_bounds = array<i64: 2>, scalar_prefetch = 0 : i64, scratch_operands = 0 : i64, tpu.core_type = #tpu.core_type<tc>, window_params = [{pipeline_mode = #tpu.pipeline_mode<synchronous>, transform_indices = @transform_0, window_bounds = array<i64: 8, 128>}, {pipeline_mode = #tpu.pipeline_mode<synchronous>, transform_indices = @transform_1, window_bounds = array<i64: 8, 128>}, {transform_indices = @transform_2, window_bounds = array<i64: 8, 128>}]} {
    %c0 = arith.constant 0 : index
    %c0_0 = arith.constant 0 : index
    %0 = vector.load %arg1[%c0, %c0_0] : memref<8x128xf32, #tpu.memory_space<vmem>>, vector<8x128xf32>
    %c0_1 = arith.constant 0 : index
    %c0_2 = arith.constant 0 : index
    %1 = vector.load %arg2[%c0_1, %c0_2] : memref<8x128xf32, #tpu.memory_space<vmem>>, vector<8x128xf32>
    %2 = arith.addf %0, %1 : vector<8x128xf32>
    %c0_3 = arith.constant 0 : index
    %c0_4 = arith.constant 0 : index
    %3 = vector.load %arg3[%c0_3, %c0_4] : memref<8x128xf32, #tpu.memory_space<vmem>>, vector<8x128xf32>
    tpu.vector_store %arg3[%c0_3, %c0_4], %2 {strides = array<i32>} : memref<8x128xf32, #tpu.memory_space<vmem>>, vector<8x128xf32>,
    return
  }
  func.func @transform_0(%arg0: i32) -> (i32, i32) {
    %c0_i32 = arith.constant 0 : i32
    %c0_i32_0 = arith.constant 0 : i32
    return %arg0, %c0_i32 : i32, i32
  }
  func.func @transform_1(%arg0: i32) -> (i32, i32) {
    %c0_i32 = arith.constant 0 : i32
    %c0_i32_0 = arith.constant 0 : i32
    %c0_i32_1 = arith.constant 0 : i32
    return %c0_i32, %c0_i32_0 : i32, i32
  }
  func.func @transform_2(%arg0: i32) -> (i32, i32) {
    %c0_i32 = arith.constant 0 : i32
    %c0_i32_0 = arith.constant 0 : i32
    return %arg0, %c0_i32 : i32, i32
  }
}

module attributes {stable_mosaic.version = 11 : i64} {
  func.func @block_kernel(%arg0: i32, %arg1: i32, %arg2: memref<1x16x32xf32, #tpu.memory_space<vmem>>, %arg3: memref<1x32xf32, #tpu.memory_space<vmem>>, %arg4: memref<1x32xf32, #tpu.memory_space<vmem>>, %arg5: memref<32x32xbf16, #tpu.memory_space<vmem>>, %arg6: memref<32x32xbf16, #tpu.memory_space<vmem>>, %arg7: memref<32x32xbf16, #tpu.memory_space<vmem>>, %arg8: memref<32x32xbf16, #tpu.memory_space<vmem>>, %arg9: memref<1x32xf32, #tpu.memory_space<vmem>>, %arg10: memref<1x32xf32, #tpu.memory_space<vmem>>, %arg11: memref<1x32xf32, #tpu.memory_space<vmem>>, %arg12: memref<32x128xbf16, #tpu.memory_space<vmem>>, %arg13: memref<1x128xf32, #tpu.memory_space<vmem>>, %arg14: memref<128x32xbf16, #tpu.memory_space<vmem>>, %arg15: memref<1x32xf32, #tpu.memory_space<vmem>>, %arg16: memref<1x8x32xf32, #tpu.memory_space<vmem>>, %arg17: memref<2x4x16x8xbf16, #tpu.memory_space<vmem>>, %arg18: memref<4x8x8xbf16, #tpu.memory_space<vmem>>, %arg19: memref<8x32xbf16, #tpu.memory_space<vmem>>) attributes {dimension_semantics = [#tpu.dimension_semantics<parallel>, #tpu.dimension_semantics<arbitrary>], iteration_bounds = array<i64: 2, 2>, scalar_prefetch = 0 : i64, scratch_operands = 3 : i64, tpu.core_type = #tpu.core_type<tc>, window_params = [{transform_indices = @transform_0, window_bounds = array<i64: 1, 16, 32>}, {pipeline_mode = #tpu.pipeline_mode<synchronous>, transform_indices = @transform_1, window_bounds = array<i64: 1, 32>}, {pipeline_mode = #tpu.pipeline_mode<synchronous>, transform_indices = @transform_2, window_bounds = array<i64: 1, 32>}, {pipeline_mode = #tpu.pipeline_mode<synchronous>, transform_indices = @transform_3, window_bounds = array<i64: 32, 32>}, {pipeline_mode = #tpu.pipeline_mode<synchronous>, transform_indices = @transform_4, window_bounds = array<i64: 32, 32>}, {pipeline_mode = #tpu.pipeline_mode<synchronous>, transform_indices = @transform_5, window_bounds = array<i64: 32, 32>}, {pipeline_mode = #tpu.pipeline_mode<synchronous>, transform_indices = @transform_6, window_bounds = array<i64: 32, 32>}, {pipeline_mode = #tpu.pipeline_mode<synchronous>, transform_indices = @transform_7, window_bounds = array<i64: 1, 32>}, {pipeline_mode = #tpu.pipeline_mode<synchronous>, transform_indices = @transform_8, window_bounds = array<i64: 1, 32>}, {pipeline_mode = #tpu.pipeline_mode<synchronous>, transform_indices = @transform_9, window_bounds = array<i64: 1, 32>}, {pipeline_mode = #tpu.pipeline_mode<synchronous>, transform_indices = @transform_10, window_bounds = array<i64: 32, 128>}, {pipeline_mode = #tpu.pipeline_mode<synchronous>, transform_indices = @transform_11, window_bounds = array<i64: 1, 128>}, {pipeline_mode = #tpu.pipeline_mode<synchronous>, transform_indices = @transform_12, window_bounds = array<i64: 128, 32>}, {pipeline_mode = #tpu.pipeline_mode<synchronous>, transform_indices = @transform_13, window_bounds = array<i64: 1, 32>}, {transform_indices = @transform_14, window_bounds = array<i64: 1, 8, 32>}]} {
    %c0_i32 = arith.constant 0 : i32
    %0 = arith.cmpi eq, %arg1, %c0_i32 : i32
    %1 = arith.extui %0 : i1 to i32
    %c0_i32_0 = arith.constant 0 : i32
    %2 = arith.cmpi ne, %1, %c0_i32_0 : i32
    scf.if %2 {
      %c0_75 = arith.constant 0 : index
      %c0_76 = arith.constant 0 : index
      %c0_77 = arith.constant 0 : index
      %151 = vector.load %arg2[%c0_75, %c0_76, %c0_77] : memref<1x16x32xf32, #tpu.memory_space<vmem>>, vector<1x16x32xf32>
      %152 = vector.shape_cast %151 : vector<1x16x32xf32> to vector<16x32xf32>
      %c0_78 = arith.constant 0 : index
      %c0_79 = arith.constant 0 : index
      %153 = vector.load %arg3[%c0_78, %c0_79] : memref<1x32xf32, #tpu.memory_space<vmem>>, vector<1x32xf32>
      %c0_80 = arith.constant 0 : index
      %c0_81 = arith.constant 0 : index
      %154 = vector.load %arg4[%c0_80, %c0_81] : memref<1x32xf32, #tpu.memory_space<vmem>>, vector<1x32xf32>
      %cst_82 = arith.constant dense<0.000000e+00> : vector<16xf32>
      %155 = vector.multi_reduction <add>, %152, %cst_82 [1] : vector<16x32xf32> to vector<16xf32>
      %156 = vector.shape_cast %155 : vector<16xf32> to vector<16x1xf32>
      %cst_83 = arith.constant 3.200000e+01 : f32
      %157 = vector.broadcast %cst_83 : f32 to vector<16x1xf32>
      %158 = arith.divf %156, %157 : vector<16x1xf32>
      %159 = vector.broadcast %158 : vector<16x1xf32> to vector<16x32xf32>
      %160 = arith.subf %152, %159 : vector<16x32xf32>
      %161 = arith.mulf %160, %160 : vector<16x32xf32>
      %cst_84 = arith.constant dense<0.000000e+00> : vector<16xf32>
      %162 = vector.multi_reduction <add>, %161, %cst_84 [1] : vector<16x32xf32> to vector<16xf32>
      %163 = vector.shape_cast %162 : vector<16xf32> to vector<16x1xf32>
      %cst_85 = arith.constant 3.200000e+01 : f32
      %164 = vector.broadcast %cst_85 : f32 to vector<16x1xf32>
      %165 = arith.divf %163, %164 : vector<16x1xf32>
      %166 = vector.broadcast %158 : vector<16x1xf32> to vector<16x32xf32>
      %167 = arith.subf %152, %166 : vector<16x32xf32>
      %cst_86 = arith.constant 9.99999974E-6 : f32
      %168 = vector.broadcast %cst_86 : f32 to vector<16x1xf32>
      %169 = arith.addf %165, %168 : vector<16x1xf32>
      %170 = math.rsqrt %169 : vector<16x1xf32>
      %171 = vector.broadcast %170 : vector<16x1xf32> to vector<16x32xf32>
      %172 = arith.mulf %167, %171 : vector<16x32xf32>
      %173 = vector.broadcast %153 : vector<1x32xf32> to vector<16x32xf32>
      %174 = arith.mulf %172, %173 : vector<16x32xf32>
      %175 = vector.broadcast %154 : vector<1x32xf32> to vector<16x32xf32>
      %176 = arith.addf %174, %175 : vector<16x32xf32>
      %177 = arith.truncf %176 : vector<16x32xf32> to vector<16x32xbf16>
      %c0_87 = arith.constant 0 : index
      %c0_88 = arith.constant 0 : index
      %178 = vector.load %arg6[%c0_87, %c0_88] : memref<32x32xbf16, #tpu.memory_space<vmem>>, vector<32x32xbf16>
      %cst_89 = arith.constant dense<0.000000e+00> : vector<16x32xf32>
      %179 = tpu.matmul %177, %178, %cst_89 {dimension_numbers = #tpu.dot_dimension_numbers<[1], [0], [0], [1], [0, 0, 1, 1], [], []>} : vector<16x32xbf16>, vector<32x32xbf16>, vector<16x32xf32> -> vector<16x32xf32>
      %c0_90 = arith.constant 0 : index
      %c0_91 = arith.constant 0 : index
      %180 = vector.load %arg7[%c0_90, %c0_91] : memref<32x32xbf16, #tpu.memory_space<vmem>>, vector<32x32xbf16>
      %cst_92 = arith.constant dense<0.000000e+00> : vector<16x32xf32>
      %181 = tpu.matmul %177, %180, %cst_92 {dimension_numbers = #tpu.dot_dimension_numbers<[1], [0], [0], [1], [0, 0, 1, 1], [], []>} : vector<16x32xbf16>, vector<32x32xbf16>, vector<16x32xf32> -> vector<16x32xf32>
      %182 = vector.extract_strided_slice %179 {offsets = [0, 0], sizes = [16, 8], strides = [1, 1]} : vector<16x32xf32> to vector<16x8xf32>
      %183 = arith.truncf %182 : vector<16x8xf32> to vector<16x8xbf16>
      %c0_93 = arith.constant 0 : index
      %c0_94 = arith.constant 0 : index
      %c0_95 = arith.constant 0 : index
      %c0_96 = arith.constant 0 : index
      %184 = vector.load %arg17[%c0_93, %c0_94, %c0_95, %c0_96] : memref<2x4x16x8xbf16, #tpu.memory_space<vmem>>, vector<1x1x16x8xbf16>
      %185 = vector.shape_cast %184 : vector<1x1x16x8xbf16> to vector<16x8xbf16>
      %186 = vector.shape_cast %183 : vector<16x8xbf16> to vector<1x1x16x8xbf16>
      tpu.vector_store %arg17[%c0_93, %c0_94, %c0_95, %c0_96], %186 {strides = array<i32>} : memref<2x4x16x8xbf16, #tpu.memory_space<vmem>>, vector<1x1x16x8xbf16>,
      %187 = vector.extract_strided_slice %181 {offsets = [0, 0], sizes = [16, 8], strides = [1, 1]} : vector<16x32xf32> to vector<16x8xf32>
      %188 = arith.truncf %187 : vector<16x8xf32> to vector<16x8xbf16>
      %c1_97 = arith.constant 1 : index
      %c0_98 = arith.constant 0 : index
      %c0_99 = arith.constant 0 : index
      %c0_100 = arith.constant 0 : index
      %189 = vector.load %arg17[%c1_97, %c0_98, %c0_99, %c0_100] : memref<2x4x16x8xbf16, #tpu.memory_space<vmem>>, vector<1x1x16x8xbf16>
      %190 = vector.shape_cast %189 : vector<1x1x16x8xbf16> to vector<16x8xbf16>
      %191 = vector.shape_cast %188 : vector<16x8xbf16> to vector<1x1x16x8xbf16>
      tpu.vector_store %arg17[%c1_97, %c0_98, %c0_99, %c0_100], %191 {strides = array<i32>} : memref<2x4x16x8xbf16, #tpu.memory_space<vmem>>, vector<1x1x16x8xbf16>,
      %192 = vector.extract_strided_slice %179 {offsets = [0, 8], sizes = [16, 8], strides = [1, 1]} : vector<16x32xf32> to vector<16x8xf32>
      %193 = arith.truncf %192 : vector<16x8xf32> to vector<16x8xbf16>
      %c0_101 = arith.constant 0 : index
      %c1_102 = arith.constant 1 : index
      %c0_103 = arith.constant 0 : index
      %c0_104 = arith.constant 0 : index
      %194 = vector.load %arg17[%c0_101, %c1_102, %c0_103, %c0_104] : memref<2x4x16x8xbf16, #tpu.memory_space<vmem>>, vector<1x1x16x8xbf16>
      %195 = vector.shape_cast %194 : vector<1x1x16x8xbf16> to vector<16x8xbf16>
      %196 = vector.shape_cast %193 : vector<16x8xbf16> to vector<1x1x16x8xbf16>
      tpu.vector_store %arg17[%c0_101, %c1_102, %c0_103, %c0_104], %196 {strides = array<i32>} : memref<2x4x16x8xbf16, #tpu.memory_space<vmem>>, vector<1x1x16x8xbf16>,
      %197 = vector.extract_strided_slice %181 {offsets = [0, 8], sizes = [16, 8], strides = [1, 1]} : vector<16x32xf32> to vector<16x8xf32>
      %198 = arith.truncf %197 : vector<16x8xf32> to vector<16x8xbf16>
      %c1_105 = arith.constant 1 : index
      %c1_106 = arith.constant 1 : index
      %c0_107 = arith.constant 0 : index
      %c0_108 = arith.constant 0 : index
      %199 = vector.load %arg17[%c1_105, %c1_106, %c0_107, %c0_108] : memref<2x4x16x8xbf16, #tpu.memory_space<vmem>>, vector<1x1x16x8xbf16>
      %200 = vector.shape_cast %199 : vector<1x1x16x8xbf16> to vector<16x8xbf16>
      %201 = vector.shape_cast %198 : vector<16x8xbf16> to vector<1x1x16x8xbf16>
      tpu.vector_store %arg17[%c1_105, %c1_106, %c0_107, %c0_108], %201 {strides = array<i32>} : memref<2x4x16x8xbf16, #tpu.memory_space<vmem>>, vector<1x1x16x8xbf16>,
      %202 = vector.extract_strided_slice %179 {offsets = [0, 16], sizes = [16, 8], strides = [1, 1]} : vector<16x32xf32> to vector<16x8xf32>
      %203 = arith.truncf %202 : vector<16x8xf32> to vector<16x8xbf16>
      %c0_109 = arith.constant 0 : index
      %c2_110 = arith.constant 2 : index
      %c0_111 = arith.constant 0 : index
      %c0_112 = arith.constant 0 : index
      %204 = vector.load %arg17[%c0_109, %c2_110, %c0_111, %c0_112] : memref<2x4x16x8xbf16, #tpu.memory_space<vmem>>, vector<1x1x16x8xbf16>
      %205 = vector.shape_cast %204 : vector<1x1x16x8xbf16> to vector<16x8xbf16>
      %206 = vector.shape_cast %203 : vector<16x8xbf16> to vector<1x1x16x8xbf16>
      tpu.vector_store %arg17[%c0_109, %c2_110, %c0_111, %c0_112], %206 {strides = array<i32>} : memref<2x4x16x8xbf16, #tpu.memory_space<vmem>>, vector<1x1x16x8xbf16>,
      %207 = vector.extract_strided_slice %181 {offsets = [0, 16], sizes = [16, 8], strides = [1, 1]} : vector<16x32xf32> to vector<16x8xf32>
      %208 = arith.truncf %207 : vector<16x8xf32> to vector<16x8xbf16>
      %c1_113 = arith.constant 1 : index
      %c2_114 = arith.constant 2 : index
      %c0_115 = arith.constant 0 : index
      %c0_116 = arith.constant 0 : index
      %209 = vector.load %arg17[%c1_113, %c2_114, %c0_115, %c0_116] : memref<2x4x16x8xbf16, #tpu.memory_space<vmem>>, vector<1x1x16x8xbf16>
      %210 = vector.shape_cast %209 : vector<1x1x16x8xbf16> to vector<16x8xbf16>
      %211 = vector.shape_cast %208 : vector<16x8xbf16> to vector<1x1x16x8xbf16>
      tpu.vector_store %arg17[%c1_113, %c2_114, %c0_115, %c0_116], %211 {strides = array<i32>} : memref<2x4x16x8xbf16, #tpu.memory_space<vmem>>, vector<1x1x16x8xbf16>,
      %212 = vector.extract_strided_slice %179 {offsets = [0, 24], sizes = [16, 8], strides = [1, 1]} : vector<16x32xf32> to vector<16x8xf32>
      %213 = arith.truncf %212 : vector<16x8xf32> to vector<16x8xbf16>
      %c0_117 = arith.constant 0 : index
      %c3_118 = arith.constant 3 : index
      %c0_119 = arith.constant 0 : index
      %c0_120 = arith.constant 0 : index
      %214 = vector.load %arg17[%c0_117, %c3_118, %c0_119, %c0_120] : memref<2x4x16x8xbf16, #tpu.memory_space<vmem>>, vector<1x1x16x8xbf16>
      %215 = vector.shape_cast %214 : vector<1x1x16x8xbf16> to vector<16x8xbf16>
      %216 = vector.shape_cast %213 : vector<16x8xbf16> to vector<1x1x16x8xbf16>
      tpu.vector_store %arg17[%c0_117, %c3_118, %c0_119, %c0_120], %216 {strides = array<i32>} : memref<2x4x16x8xbf16, #tpu.memory_space<vmem>>, vector<1x1x16x8xbf16>,
      %217 = vector.extract_strided_slice %181 {offsets = [0, 24], sizes = [16, 8], strides = [1, 1]} : vector<16x32xf32> to vector<16x8xf32>
      %218 = arith.truncf %217 : vector<16x8xf32> to vector<16x8xbf16>
      %c1_121 = arith.constant 1 : index
      %c3_122 = arith.constant 3 : index
      %c0_123 = arith.constant 0 : index
      %c0_124 = arith.constant 0 : index
      %219 = vector.load %arg17[%c1_121, %c3_122, %c0_123, %c0_124] : memref<2x4x16x8xbf16, #tpu.memory_space<vmem>>, vector<1x1x16x8xbf16>
      %220 = vector.shape_cast %219 : vector<1x1x16x8xbf16> to vector<16x8xbf16>
      %221 = vector.shape_cast %218 : vector<16x8xbf16> to vector<1x1x16x8xbf16>
      tpu.vector_store %arg17[%c1_121, %c3_122, %c0_123, %c0_124], %221 {strides = array<i32>} : memref<2x4x16x8xbf16, #tpu.memory_space<vmem>>, vector<1x1x16x8xbf16>,
    } else {
    }
    %c8_i32 = arith.constant 8 : i32
    %3 = arith.muli %arg1, %c8_i32 : i32
    %4 = tpu.assume_multiple %3, 8 : i32
    %c0 = arith.constant 0 : index
    %5 = arith.index_cast %4 : i32 to index
    %c0_1 = arith.constant 0 : index
    %6 = vector.load %arg2[%c0, %5, %c0_1] : memref<1x16x32xf32, #tpu.memory_space<vmem>>, vector<1x8x32xf32>
    %7 = vector.shape_cast %6 : vector<1x8x32xf32> to vector<8x32xf32>
    %c0_2 = arith.constant 0 : index
    %c0_3 = arith.constant 0 : index
    %8 = vector.load %arg3[%c0_2, %c0_3] : memref<1x32xf32, #tpu.memory_space<vmem>>, vector<1x32xf32>
    %c0_4 = arith.constant 0 : index
    %c0_5 = arith.constant 0 : index
    %9 = vector.load %arg4[%c0_4, %c0_5] : memref<1x32xf32, #tpu.memory_space<vmem>>, vector<1x32xf32>
    %cst = arith.constant dense<0.000000e+00> : vector<8xf32>
    %10 = vector.multi_reduction <add>, %7, %cst [1] : vector<8x32xf32> to vector<8xf32>
    %11 = vector.shape_cast %10 : vector<8xf32> to vector<8x1xf32>
    %cst_6 = arith.constant 3.200000e+01 : f32
    %12 = vector.broadcast %cst_6 : f32 to vector<8x1xf32>
    %13 = arith.divf %11, %12 : vector<8x1xf32>
    %14 = vector.broadcast %13 : vector<8x1xf32> to vector<8x32xf32>
    %15 = arith.subf %7, %14 : vector<8x32xf32>
    %16 = arith.mulf %15, %15 : vector<8x32xf32>
    %cst_7 = arith.constant dense<0.000000e+00> : vector<8xf32>
    %17 = vector.multi_reduction <add>, %16, %cst_7 [1] : vector<8x32xf32> to vector<8xf32>
    %18 = vector.shape_cast %17 : vector<8xf32> to vector<8x1xf32>
    %cst_8 = arith.constant 3.200000e+01 : f32
    %19 = vector.broadcast %cst_8 : f32 to vector<8x1xf32>
    %20 = arith.divf %18, %19 : vector<8x1xf32>
    %21 = vector.broadcast %13 : vector<8x1xf32> to vector<8x32xf32>
    %22 = arith.subf %7, %21 : vector<8x32xf32>
    %cst_9 = arith.constant 9.99999974E-6 : f32
    %23 = vector.broadcast %cst_9 : f32 to vector<8x1xf32>
    %24 = arith.addf %20, %23 : vector<8x1xf32>
    %25 = math.rsqrt %24 : vector<8x1xf32>
    %26 = vector.broadcast %25 : vector<8x1xf32> to vector<8x32xf32>
    %27 = arith.mulf %22, %26 : vector<8x32xf32>
    %28 = vector.broadcast %8 : vector<1x32xf32> to vector<8x32xf32>
    %29 = arith.mulf %27, %28 : vector<8x32xf32>
    %30 = vector.broadcast %9 : vector<1x32xf32> to vector<8x32xf32>
    %31 = arith.addf %29, %30 : vector<8x32xf32>
    %32 = arith.truncf %31 : vector<8x32xf32> to vector<8x32xbf16>
    %cst_10 = arith.constant 3.200000e+01 : f32
    %cst_11 = arith.constant -5.000000e-01 : f32
    %33 = math.powf %cst_10, %cst_11 : f32
    %c0_12 = arith.constant 0 : index
    %c0_13 = arith.constant 0 : index
    %34 = vector.load %arg5[%c0_12, %c0_13] : memref<32x32xbf16, #tpu.memory_space<vmem>>, vector<32x32xbf16>
    %cst_14 = arith.constant dense<0.000000e+00> : vector<8x32xf32>
    %35 = tpu.matmul %32, %34, %cst_14 {dimension_numbers = #tpu.dot_dimension_numbers<[1], [0], [0], [1], [0, 0, 1, 1], [], []>} : vector<8x32xbf16>, vector<32x32xbf16>, vector<8x32xf32> -> vector<8x32xf32>
    %36 = vector.broadcast %33 : f32 to vector<8x32xf32>
    %37 = arith.mulf %35, %36 : vector<8x32xf32>
    %38 = vector.extract_strided_slice %37 {offsets = [0, 0], sizes = [8, 8], strides = [1, 1]} : vector<8x32xf32> to vector<8x8xf32>
    %39 = arith.truncf %38 : vector<8x8xf32> to vector<8x8xbf16>
    %c0_15 = arith.constant 0 : index
    %c0_16 = arith.constant 0 : index
    %c0_17 = arith.constant 0 : index
    %40 = vector.load %arg18[%c0_15, %c0_16, %c0_17] : memref<4x8x8xbf16, #tpu.memory_space<vmem>>, vector<1x8x8xbf16>
    %41 = vector.shape_cast %40 : vector<1x8x8xbf16> to vector<8x8xbf16>
    %42 = vector.shape_cast %39 : vector<8x8xbf16> to vector<1x8x8xbf16>
    tpu.vector_store %arg18[%c0_15, %c0_16, %c0_17], %42 {strides = array<i32>} : memref<4x8x8xbf16, #tpu.memory_space<vmem>>, vector<1x8x8xbf16>,
    %43 = vector.extract_strided_slice %37 {offsets = [0, 8], sizes = [8, 8], strides = [1, 1]} : vector<8x32xf32> to vector<8x8xf32>
    %44 = arith.truncf %43 : vector<8x8xf32> to vector<8x8xbf16>
    %c1 = arith.constant 1 : index
    %c0_18 = arith.constant 0 : index
    %c0_19 = arith.constant 0 : index
    %45 = vector.load %arg18[%c1, %c0_18, %c0_19] : memref<4x8x8xbf16, #tpu.memory_space<vmem>>, vector<1x8x8xbf16>
    %46 = vector.shape_cast %45 : vector<1x8x8xbf16> to vector<8x8xbf16>
    %47 = vector.shape_cast %44 : vector<8x8xbf16> to vector<1x8x8xbf16>
    tpu.vector_store %arg18[%c1, %c0_18, %c0_19], %47 {strides = array<i32>} : memref<4x8x8xbf16, #tpu.memory_space<vmem>>, vector<1x8x8xbf16>,
    %48 = vector.extract_strided_slice %37 {offsets = [0, 16], sizes = [8, 8], strides = [1, 1]} : vector<8x32xf32> to vector<8x8xf32>
    %49 = arith.truncf %48 : vector<8x8xf32> to vector<8x8xbf16>
    %c2 = arith.constant 2 : index
    %c0_20 = arith.constant 0 : index
    %c0_21 = arith.constant 0 : index
    %50 = vector.load %arg18[%c2, %c0_20, %c0_21] : memref<4x8x8xbf16, #tpu.memory_space<vmem>>, vector<1x8x8xbf16>
    %51 = vector.shape_cast %50 : vector<1x8x8xbf16> to vector<8x8xbf16>
    %52 = vector.shape_cast %49 : vector<8x8xbf16> to vector<1x8x8xbf16>
    tpu.vector_store %arg18[%c2, %c0_20, %c0_21], %52 {strides = array<i32>} : memref<4x8x8xbf16, #tpu.memory_space<vmem>>, vector<1x8x8xbf16>,
    %53 = vector.extract_strided_slice %37 {offsets = [0, 24], sizes = [8, 8], strides = [1, 1]} : vector<8x32xf32> to vector<8x8xf32>
    %54 = arith.truncf %53 : vector<8x8xf32> to vector<8x8xbf16>
    %c3 = arith.constant 3 : index
    %c0_22 = arith.constant 0 : index
    %c0_23 = arith.constant 0 : index
    %55 = vector.load %arg18[%c3, %c0_22, %c0_23] : memref<4x8x8xbf16, #tpu.memory_space<vmem>>, vector<1x8x8xbf16>
    %56 = vector.shape_cast %55 : vector<1x8x8xbf16> to vector<8x8xbf16>
    %57 = vector.shape_cast %54 : vector<8x8xbf16> to vector<1x8x8xbf16>
    tpu.vector_store %arg18[%c3, %c0_22, %c0_23], %57 {strides = array<i32>} : memref<4x8x8xbf16, #tpu.memory_space<vmem>>, vector<1x8x8xbf16>,
    %c0_24 = arith.constant 0 : index
    %c0_25 = arith.constant 0 : index
    %c0_26 = arith.constant 0 : index
    %58 = vector.load %arg18[%c0_24, %c0_25, %c0_26] : memref<4x8x8xbf16, #tpu.memory_space<vmem>>, vector<4x8x8xbf16>
    %c0_27 = arith.constant 0 : index
    %c0_28 = arith.constant 0 : index
    %c0_29 = arith.constant 0 : index
    %c0_30 = arith.constant 0 : index
    %59 = vector.load %arg17[%c0_27, %c0_28, %c0_29, %c0_30] : memref<2x4x16x8xbf16, #tpu.memory_space<vmem>>, vector<1x4x16x8xbf16>
    %60 = vector.shape_cast %59 : vector<1x4x16x8xbf16> to vector<4x16x8xbf16>
    "tpu.trace_start"() <{level = 10 : i32, message = "hqd,hkd->hqk"}> : () -> ()
    %cst_31 = arith.constant dense<0.000000e+00> : vector<4x8x16xf32>
    %61 = tpu.matmul %58, %60, %cst_31 {dimension_numbers = #tpu.dot_dimension_numbers<[2], [2], [1], [1], [0, 0, 0, 1, 1, 1], [0], [0]>} : vector<4x8x8xbf16>, vector<4x16x8xbf16>, vector<4x8x16xf32> -> vector<4x8x16xf32>
    "tpu.trace_stop"() : () -> ()
    %62 = tpu.iota {dimensions = array<i32: 0>} : vector<8x16xi32>
    %63 = vector.broadcast %4 : i32 to vector<8x16xi32>
    %64 = arith.addi %63, %62 : vector<8x16xi32>
    %65 = tpu.iota {dimensions = array<i32: 1>} : vector<8x16xi32>
    %66 = arith.cmpi sle, %65, %64 : vector<8x16xi32>
    %67 = vector.shape_cast %66 : vector<8x16xi1> to vector<1x8x16xi1>
    %cst_32 = arith.constant -1.000000e+30 : f32
    %68 = vector.shape_cast %67 : vector<1x8x16xi1> to vector<1x8x16xi1>
    %69 = vector.broadcast %68 : vector<1x8x16xi1> to vector<4x8x16xi1>
    %70 = vector.broadcast %cst_32 : f32 to vector<4x8x16xf32>
    %71 = arith.select %69, %61, %70 : vector<4x8x16xi1>, vector<4x8x16xf32>
    %cst_33 = arith.constant dense<0xFF800000> : vector<4x8xf32>
    %72 = vector.multi_reduction <maximumf>, %71, %cst_33 [2] : vector<4x8x16xf32> to vector<4x8xf32>
    %73 = vector.shape_cast %72 : vector<4x8xf32> to vector<4x8x1xf32>
    %74 = vector.broadcast %73 : vector<4x8x1xf32> to vector<4x8x16xf32>
    %75 = arith.subf %71, %74 : vector<4x8x16xf32>
    %76 = math.exp %75 : vector<4x8x16xf32>
    %cst_34 = arith.constant dense<0.000000e+00> : vector<4x8xf32>
    %77 = vector.multi_reduction <add>, %76, %cst_34 [2] : vector<4x8x16xf32> to vector<4x8xf32>
    %78 = vector.shape_cast %77 : vector<4x8xf32> to vector<4x8x1xf32>
    %79 = tpu.reciprocal %78 {approx = true} : vector<4x8x1xf32> -> vector<4x8x1xf32>
    %80 = vector.broadcast %79 : vector<4x8x1xf32> to vector<4x8x16xf32>
    %81 = arith.mulf %76, %80 : vector<4x8x16xf32>
    %82 = arith.truncf %81 : vector<4x8x16xf32> to vector<4x8x16xbf16>
    %c1_35 = arith.constant 1 : index
    %c0_36 = arith.constant 0 : index
    %c0_37 = arith.constant 0 : index
    %c0_38 = arith.constant 0 : index
    %83 = vector.load %arg17[%c1_35, %c0_36, %c0_37, %c0_38] : memref<2x4x16x8xbf16, #tpu.memory_space<vmem>>, vector<1x4x16x8xbf16>
    %84 = vector.shape_cast %83 : vector<1x4x16x8xbf16> to vector<4x16x8xbf16>
    "tpu.trace_start"() <{level = 10 : i32, message = "hqk,hkd->hqd"}> : () -> ()
    %cst_39 = arith.constant dense<0.000000e+00> : vector<4x8x8xf32>
    %85 = tpu.matmul %82, %84, %cst_39 {dimension_numbers = #tpu.dot_dimension_numbers<[2], [1], [1], [2], [0, 0, 0, 1, 1, 2], [0], [0]>} : vector<4x8x16xbf16>, vector<4x16x8xbf16>, vector<4x8x8xf32> -> vector<4x8x8xf32>
    "tpu.trace_stop"() : () -> ()
    %86 = vector.extract_strided_slice %85 {offsets = [0, 0, 0], sizes = [1, 8, 8], strides = [1, 1, 1]} : vector<4x8x8xf32> to vector<1x8x8xf32>
    %87 = vector.shape_cast %86 : vector<1x8x8xf32> to vector<8x8xf32>
    %88 = arith.truncf %87 : vector<8x8xf32> to vector<8x8xbf16>
    %c0_40 = arith.constant 0 : index
    %c0_41 = arith.constant 0 : index
    %89 = vector.load %arg19[%c0_40, %c0_41] : memref<8x32xbf16, #tpu.memory_space<vmem>>, vector<8x8xbf16>
    tpu.vector_store %arg19[%c0_40, %c0_41], %88 {strides = array<i32>} : memref<8x32xbf16, #tpu.memory_space<vmem>>, vector<8x8xbf16>,
    %90 = vector.extract_strided_slice %85 {offsets = [1, 0, 0], sizes = [1, 8, 8], strides = [1, 1, 1]} : vector<4x8x8xf32> to vector<1x8x8xf32>
    %91 = vector.shape_cast %90 : vector<1x8x8xf32> to vector<8x8xf32>
    %92 = arith.truncf %91 : vector<8x8xf32> to vector<8x8xbf16>
    %c0_42 = arith.constant 0 : index
    %c8 = arith.constant 8 : index
    %93 = vector.load %arg19[%c0_42, %c8] : memref<8x32xbf16, #tpu.memory_space<vmem>>, vector<8x8xbf16>
    tpu.vector_store %arg19[%c0_42, %c8], %92 {strides = array<i32>} : memref<8x32xbf16, #tpu.memory_space<vmem>>, vector<8x8xbf16>,
    %94 = vector.extract_strided_slice %85 {offsets = [2, 0, 0], sizes = [1, 8, 8], strides = [1, 1, 1]} : vector<4x8x8xf32> to vector<1x8x8xf32>
    %95 = vector.shape_cast %94 : vector<1x8x8xf32> to vector<8x8xf32>
    %96 = arith.truncf %95 : vector<8x8xf32> to vector<8x8xbf16>
    %c0_43 = arith.constant 0 : index
    %c16 = arith.constant 16 : index
    %97 = vector.load %arg19[%c0_43, %c16] : memref<8x32xbf16, #tpu.memory_space<vmem>>, vector<8x8xbf16>
    tpu.vector_store %arg19[%c0_43, %c16], %96 {strides = array<i32>} : memref<8x32xbf16, #tpu.memory_space<vmem>>, vector<8x8xbf16>,
    %98 = vector.extract_strided_slice %85 {offsets = [3, 0, 0], sizes = [1, 8, 8], strides = [1, 1, 1]} : vector<4x8x8xf32> to vector<1x8x8xf32>
    %99 = vector.shape_cast %98 : vector<1x8x8xf32> to vector<8x8xf32>
    %100 = arith.truncf %99 : vector<8x8xf32> to vector<8x8xbf16>
    %c0_44 = arith.constant 0 : index
    %c24 = arith.constant 24 : index
    %101 = vector.load %arg19[%c0_44, %c24] : memref<8x32xbf16, #tpu.memory_space<vmem>>, vector<8x8xbf16>
    tpu.vector_store %arg19[%c0_44, %c24], %100 {strides = array<i32>} : memref<8x32xbf16, #tpu.memory_space<vmem>>, vector<8x8xbf16>,
    %c0_45 = arith.constant 0 : index
    %c0_46 = arith.constant 0 : index
    %102 = vector.load %arg9[%c0_45, %c0_46] : memref<1x32xf32, #tpu.memory_space<vmem>>, vector<1x32xf32>
    %103 = vector.broadcast %102 : vector<1x32xf32> to vector<8x32xf32>
    %104 = arith.addf %7, %103 : vector<8x32xf32>
    %c0_47 = arith.constant 0 : index
    %c0_48 = arith.constant 0 : index
    %105 = vector.load %arg19[%c0_47, %c0_48] : memref<8x32xbf16, #tpu.memory_space<vmem>>, vector<8x32xbf16>
    %c0_49 = arith.constant 0 : index
    %c0_50 = arith.constant 0 : index
    %106 = vector.load %arg8[%c0_49, %c0_50] : memref<32x32xbf16, #tpu.memory_space<vmem>>, vector<32x32xbf16>
    %cst_51 = arith.constant dense<0.000000e+00> : vector<8x32xf32>
    %107 = tpu.matmul %105, %106, %cst_51 {dimension_numbers = #tpu.dot_dimension_numbers<[1], [0], [0], [1], [0, 0, 1, 1], [], []>} : vector<8x32xbf16>, vector<32x32xbf16>, vector<8x32xf32> -> vector<8x32xf32>
    %108 = arith.addf %104, %107 : vector<8x32xf32>
    %c0_52 = arith.constant 0 : index
    %c0_53 = arith.constant 0 : index
    %109 = vector.load %arg10[%c0_52, %c0_53] : memref<1x32xf32, #tpu.memory_space<vmem>>, vector<1x32xf32>
    %c0_54 = arith.constant 0 : index
    %c0_55 = arith.constant 0 : index
    %110 = vector.load %arg11[%c0_54, %c0_55] : memref<1x32xf32, #tpu.memory_space<vmem>>, vector<1x32xf32>
    %cst_56 = arith.constant dense<0.000000e+00> : vector<8xf32>
    %111 = vector.multi_reduction <add>, %108, %cst_56 [1] : vector<8x32xf32> to vector<8xf32>
    %112 = vector.shape_cast %111 : vector<8xf32> to vector<8x1xf32>
    %cst_57 = arith.constant 3.200000e+01 : f32
    %113 = vector.broadcast %cst_57 : f32 to vector<8x1xf32>
    %114 = arith.divf %112, %113 : vector<8x1xf32>
    %115 = vector.broadcast %114 : vector<8x1xf32> to vector<8x32xf32>
    %116 = arith.subf %108, %115 : vector<8x32xf32>
    %117 = arith.mulf %116, %116 : vector<8x32xf32>
    %cst_58 = arith.constant dense<0.000000e+00> : vector<8xf32>
    %118 = vector.multi_reduction <add>, %117, %cst_58 [1] : vector<8x32xf32> to vector<8xf32>
    %119 = vector.shape_cast %118 : vector<8xf32> to vector<8x1xf32>
    %cst_59 = arith.constant 3.200000e+01 : f32
    %120 = vector.broadcast %cst_59 : f32 to vector<8x1xf32>
    %121 = arith.divf %119, %120 : vector<8x1xf32>
    %122 = vector.broadcast %114 : vector<8x1xf32> to vector<8x32xf32>
    %123 = arith.subf %108, %122 : vector<8x32xf32>
    %cst_60 = arith.constant 9.99999974E-6 : f32
    %124 = vector.broadcast %cst_60 : f32 to vector<8x1xf32>
    %125 = arith.addf %121, %124 : vector<8x1xf32>
    %126 = math.rsqrt %125 : vector<8x1xf32>
    %127 = vector.broadcast %126 : vector<8x1xf32> to vector<8x32xf32>
    %128 = arith.mulf %123, %127 : vector<8x32xf32>
    %129 = vector.broadcast %109 : vector<1x32xf32> to vector<8x32xf32>
    %130 = arith.mulf %128, %129 : vector<8x32xf32>
    %131 = vector.broadcast %110 : vector<1x32xf32> to vector<8x32xf32>
    %132 = arith.addf %130, %131 : vector<8x32xf32>
    %133 = arith.truncf %132 : vector<8x32xf32> to vector<8x32xbf16>
    %c0_61 = arith.constant 0 : index
    %c0_62 = arith.constant 0 : index
    %134 = vector.load %arg12[%c0_61, %c0_62] : memref<32x128xbf16, #tpu.memory_space<vmem>>, vector<32x128xbf16>
    %cst_63 = arith.constant dense<0.000000e+00> : vector<8x128xf32>
    %135 = tpu.matmul %133, %134, %cst_63 {dimension_numbers = #tpu.dot_dimension_numbers<[1], [0], [0], [1], [0, 0, 1, 1], [], []>} : vector<8x32xbf16>, vector<32x128xbf16>, vector<8x128xf32> -> vector<8x128xf32>
    %c0_64 = arith.constant 0 : index
    %c0_65 = arith.constant 0 : index
    %136 = vector.load %arg13[%c0_64, %c0_65] : memref<1x128xf32, #tpu.memory_space<vmem>>, vector<1x128xf32>
    %137 = vector.broadcast %136 : vector<1x128xf32> to vector<8x128xf32>
    %138 = arith.addf %135, %137 : vector<8x128xf32>
    %cst_66 = arith.constant 0.000000e+00 : f32
    %139 = vector.broadcast %cst_66 : f32 to vector<8x128xf32>
    %140 = arith.maximumf %138, %139 : vector<8x128xf32>
    %141 = arith.truncf %140 : vector<8x128xf32> to vector<8x128xbf16>
    %c0_67 = arith.constant 0 : index
    %c0_68 = arith.constant 0 : index
    %142 = vector.load %arg14[%c0_67, %c0_68] : memref<128x32xbf16, #tpu.memory_space<vmem>>, vector<128x32xbf16>
    %cst_69 = arith.constant dense<0.000000e+00> : vector<8x32xf32>
    %143 = tpu.matmul %141, %142, %cst_69 {dimension_numbers = #tpu.dot_dimension_numbers<[1], [0], [0], [1], [0, 0, 1, 1], [], []>} : vector<8x128xbf16>, vector<128x32xbf16>, vector<8x32xf32> -> vector<8x32xf32>
    %c0_70 = arith.constant 0 : index
    %c0_71 = arith.constant 0 : index
    %144 = vector.load %arg15[%c0_70, %c0_71] : memref<1x32xf32, #tpu.memory_space<vmem>>, vector<1x32xf32>
    %145 = vector.broadcast %144 : vector<1x32xf32> to vector<8x32xf32>
    %146 = arith.addf %143, %145 : vector<8x32xf32>
    %147 = arith.addf %108, %146 : vector<8x32xf32>
    %c0_72 = arith.constant 0 : index
    %c0_73 = arith.constant 0 : index
    %c0_74 = arith.constant 0 : index
    %148 = vector.load %arg16[%c0_72, %c0_73, %c0_74] : memref<1x8x32xf32, #tpu.memory_space<vmem>>, vector<1x8x32xf32>
    %149 = vector.shape_cast %148 : vector<1x8x32xf32> to vector<8x32xf32>
    %150 = vector.shape_cast %147 : vector<8x32xf32> to vector<1x8x32xf32>
    tpu.vector_store %arg16[%c0_72, %c0_73, %c0_74], %150 {strides = array<i32>} : memref<1x8x32xf32, #tpu.memory_space<vmem>>, vector<1x8x32xf32>,
    return
  }
  func.func @transform_0(%arg0: i32, %arg1: i32) -> (i32, i32, i32) {
    %c0_i32 = arith.constant 0 : i32
    %c0_i32_0 = arith.constant 0 : i32
    %c0_i32_1 = arith.constant 0 : i32
    return %arg0, %c0_i32, %c0_i32_0 : i32, i32, i32
  }
  func.func @transform_1(%arg0: i32, %arg1: i32) -> (i32, i32) {
    %c0_i32 = arith.constant 0 : i32
    %c0_i32_0 = arith.constant 0 : i32
    %c0_i32_1 = arith.constant 0 : i32
    return %c0_i32, %c0_i32_0 : i32, i32
  }
  func.func @transform_2(%arg0: i32, %arg1: i32) -> (i32, i32) {
    %c0_i32 = arith.constant 0 : i32
    %c0_i32_0 = arith.constant 0 : i32
    %c0_i32_1 = arith.constant 0 : i32
    return %c0_i32, %c0_i32_0 : i32, i32
  }
  func.func @transform_3(%arg0: i32, %arg1: i32) -> (i32, i32) {
    %c0_i32 = arith.constant 0 : i32
    %c0_i32_0 = arith.constant 0 : i32
    %c0_i32_1 = arith.constant 0 : i32
    return %c0_i32, %c0_i32_0 : i32, i32
  }
  func.func @transform_4(%arg0: i32, %arg1: i32) -> (i32, i32) {
    %c0_i32 = arith.constant 0 : i32
    %c0_i32_0 = arith.constant 0 : i32
    %c0_i32_1 = arith.constant 0 : i32
    return %c0_i32, %c0_i32_0 : i32, i32
  }
  func.func @transform_5(%arg0: i32, %arg1: i32) -> (i32, i32) {
    %c0_i32 = arith.constant 0 : i32
    %c0_i32_0 = arith.constant 0 : i32
    %c0_i32_1 = arith.constant 0 : i32
    return %c0_i32, %c0_i32_0 : i32, i32
  }
  func.func @transform_6(%arg0: i32, %arg1: i32) -> (i32, i32) {
    %c0_i32 = arith.constant 0 : i32
    %c0_i32_0 = arith.constant 0 : i32
    %c0_i32_1 = arith.constant 0 : i32
    return %c0_i32, %c0_i32_0 : i32, i32
  }
  func.func @transform_7(%arg0: i32, %arg1: i32) -> (i32, i32) {
    %c0_i32 = arith.constant 0 : i32
    %c0_i32_0 = arith.constant 0 : i32
    %c0_i32_1 = arith.constant 0 : i32
    return %c0_i32, %c0_i32_0 : i32, i32
  }
  func.func @transform_8(%arg0: i32, %arg1: i32) -> (i32, i32) {
    %c0_i32 = arith.constant 0 : i32
    %c0_i32_0 = arith.constant 0 : i32
    %c0_i32_1 = arith.constant 0 : i32
    return %c0_i32, %c0_i32_0 : i32, i32
  }
  func.func @transform_9(%arg0: i32, %arg1: i32) -> (i32, i32) {
    %c0_i32 = arith.constant 0 : i32
    %c0_i32_0 = arith.constant 0 : i32
    %c0_i32_1 = arith.constant 0 : i32
    return %c0_i32, %c0_i32_0 : i32, i32
  }
  func.func @transform_10(%arg0: i32, %arg1: i32) -> (i32, i32) {
    %c0_i32 = arith.constant 0 : i32
    %c0_i32_0 = arith.constant 0 : i32
    %c0_i32_1 = arith.constant 0 : i32
    return %c0_i32, %c0_i32_0 : i32, i32
  }
  func.func @transform_11(%arg0: i32, %arg1: i32) -> (i32, i32) {
    %c0_i32 = arith.constant 0 : i32
    %c0_i32_0 = arith.constant 0 : i32
    %c0_i32_1 = arith.constant 0 : i32
    return %c0_i32, %c0_i32_0 : i32, i32
  }
  func.func @transform_12(%arg0: i32, %arg1: i32) -> (i32, i32) {
    %c0_i32 = arith.constant 0 : i32
    %c0_i32_0 = arith.constant 0 : i32
    %c0_i32_1 = arith.constant 0 : i32
    return %c0_i32, %c0_i32_0 : i32, i32
  }
  func.func @transform_13(%arg0: i32, %arg1: i32) -> (i32, i32) {
    %c0_i32 = arith.constant 0 : i32
    %c0_i32_0 = arith.constant 0 : i32
    %c0_i32_1 = arith.constant 0 : i32
    return %c0_i32, %c0_i32_0 : i32, i32
  }
  func.func @transform_14(%arg0: i32, %arg1: i32) -> (i32, i32, i32) {
    %c0_i32 = arith.constant 0 : i32
    %c0_i32_0 = arith.constant 0 : i32
    return %arg0, %arg1, %c0_i32 : i32, i32, i32
  }
}

</mosaic_0001>

<bundles_post_ra>
// kernel: tpu_custom_call.1
= control target key start
LH: loop header
LB: loop body
LE: loop exit
PB: predicated region body
PF: predicated region fallthrough
CT: control target
= control target key end

     0   :  { %7 = vsyncpa [#allocation3], 0  ;;  %s642_s0 = inlined_call_operand.hbm [shape: f32[16,128], index: 0, kind: input, shape index: {}]   ;;  %s643_s1 = inlined_call_operand.hbm [shape: f32[8,128], index: 1, kind: input, shape index: {}]   ;;  %s644_s2 = inlined_call_operand.hbm [shape: f32[16,128], index: 2, kind: output, shape index: {}]  }
   0x1   :  { %8 = vsyncpa [#allocation6], 0 }
   0x2   :  { %9 = vsyncpa [#allocation4], 0 }
   0x3   :  { %11 = vsyncpa [#allocation4 + $0x1], 0  ;;  %s459_s9 = smov 0   ;;  %s461_s10 = smov 0  }
   0x4   :  { %s463_s11 = smov 0   ;;  %s465_s12 = smov 0  }
   0x5 LB: > { %s480_s13 = sadd.s32 4294967295, %s439_s12   ;;  %s244_s14 = sadd.s32 4294967294, %s439_s12   ;;  %s439_s12 = sphi %s465_s12, %s667_s12   ;;  %s435_s11 = sphi %s463_s11, %s666_s11   ;;  %s431_s10 = sphi %s461_s10, %s665_s10   ;;  %s427_s9 = sphi %s459_s9, %s664_s9  }
   0x6   : > { %s484_s15 = sadd.s32 1, %s439_s12   ;;  %s24_s16 = sadd.s32 1, %s435_s11 }
   0x7   : > { %s21_s17 = ssub.s32 %s439_s12, %s484_s15  ;;  %p37_p0 = scmp.ne.s32.totalorder %s431_s10, %s427_s9 }
   0x8   : > { %p22_p1 = scmp.eq.s32.totalorder %s21_s17, 0  ;;  %p645_p2 = scmp.eq.s32.totalorder %s480_s13, 0 }
   0x9   : > { %p81_p3 = scmp.ne.s32.totalorder %s435_s11, %s431_s10  ;;  %p82_p4 = scmp.eq.s32.totalorder %s480_s13, 1 }
   0xa   : > { %s496_s18 = scalar_select %p22_p1, %s435_s11, %s24_s16  }
   0xb   : > { %p498_p5 = por %p82_p4, %p81_p3  ;;  %p88_p6 = scmp.eq.s32.totalorder %s244_s14, 1 }
   0xc   : > { %p245_p7 = scmp.ge.s32.totalorder %s439_s12, 1  ;;  %p505_p8 = por %p645_p2, %p37_p0 }
   0xd   : > { %s651_s19 = scalar_select %p498_p5, 1, 0 }
   0xe   : > { %s652_s20 = scalar_select %p505_p8, 1, 0 }
   0xf   : > { %p95_p9 = scmp.lt.s32.totalorder %s439_s12, 3  ;;  %p510_p10 = por %p88_p6, %p37_p0 }
  0x10   : > { %s246_s22 = sshll.u32 %s480_s13, 7  ;;  %s441_s24 = smov [#allocation2]  }
  0x11   : > { %s653_s21 = scalar_select %p510_p10, 1, 0 }
  0x12   : > { %p515_p11 = pnand %p245_p7, %p95_p9  ;;  %s110_s25 = sshll.u32 %s441_s24, 4  ;;  %s111_s25 = int_to_ptr.vmem [resolvable:$true] %s110_s25 }
  0x13   : > { %s526_s28 = scalar_lea.hbm %s642_s0, %s246_s22  ;;  %s442_s30 = smov [#allocation5]  }
  0x14   : > { %s654_s23 = scalar_select %p515_p11, 1, 0 }
  0x15   : > { %p263_p12 = pneg %p515_p11  ;;  %s121_s3 = sshll.u32 %s442_s30, 4  ;;  %s540_s3 = int_to_ptr.vmem [resolvable:$true] %s121_s3 }
  0x16   : > { %s311_s5 = scalar_lea.hbm %s526_s28, 128  ;;  %s316_s8 = scalar_lea.hbm %s642_s0, 256 }
  0x17   : > { %p530_p13 = pnand %p263_p12, %p505_p8  ;;  %p536_p0 = pnand %p263_p12, %p645_p2 }
  0x18   : > { %p312_p1 = scmp.ne.s32.totalorder %s526_s28, %s311_s5  ;;  %p317_p7 = scmp.lt.u32.totalorder %s526_s28, %s642_s0 }
  0x19   : > { %s656_s4 = scalar_select %p536_p0, 1, 0 }
  0x1a   : > { %p313_p3 = pneg %p530_p13  ;;  %p318_p9 = scmp.lt.u32.totalorder %s316_s8, %s311_s5 }
  0x1b   : > { %p320_p2 = scmp.lt.u32.totalorder %s311_s5, %s526_s28 }
  0x1c   : > { %p314_p4 = pnand %p313_p3, %p312_p1  ;;  %p319_p12 = por %p318_p9, %p317_p7 }
  0x1e   : > { %p315_p6 = pneg %p314_p4  ;;  %p321_p10 = por %p320_p2, %p319_p12 }
  0x20   : > { %p322_p5 = pnand %p321_p10, %p315_p6 }
  0x22   : > { %325 = shalt.err (!%p322_p5)
}
  0x23   : > { %s326_s17 = scalar_lea.vmem %s111_s25, 128  ;;  %p334_p11 = scmp.lt.s32.totalorder %s111_s25, %s111_s25 }
  0x24   : > { %p327_p8 = scmp.ne.s32.totalorder %s111_s25, %s326_s17  ;;  %p335_p0 = scmp.lt.s32.totalorder %s326_s17, %s326_s17 }
  0x26   : > { %p329_p1 = pnand %p327_p8, %p313_p3  ;;  %p336_p7 = por %p335_p0, %p334_p11 }
  0x28   : > { %p330_p4 = pneg %p329_p1 }
  0x2a   : > { %p337_p9 = pnand %p336_p7, %p330_p4 }
  0x2c   : > { %340 = shalt.err (!%p337_p9)
}
  0x2d   : > { %266 = dma.hbm_to_vmem [thread:$0]  (!%p530_p13), %s526_s28, 128, %s111_s25, [#allocation3]  }
  0x2e   : > { %s341_s27 = scalar_lea.hbm %s643_s1, 128  ;;  %p657_p5 = scmp.ne.s32.totalorder %s656_s4, 0 }
  0x2f   : > { %p342_p2 = scmp.ne.s32.totalorder %s643_s1, %s341_s27  ;;  %p348_p11 = scmp.lt.u32.totalorder %s341_s27, %s643_s1 }
  0x30   : > { %p343_p8 = pneg %p657_p5 }
  0x32   : > { %p344_p10 = pnand %p343_p8, %p342_p2 }
  0x34   : > { %p345_p3 = pneg %p344_p10 }
  0x36   : > { %p350_p0 = pnand %p348_p11, %p345_p3 }
  0x38   : > { %353 = shalt.err (!%p350_p0)
}
  0x39   : > { %s354_s25 = scalar_lea.vmem %s540_s3, 128  ;;  %p362_p1 = scmp.lt.s32.totalorder %s540_s3, %s540_s3 }
  0x3a   : > { %p355_p13 = scmp.ne.s32.totalorder %s540_s3, %s354_s25  ;;  %p363_p4 = scmp.lt.s32.totalorder %s354_s25, %s354_s25 }
  0x3c   : > { %p357_p6 = pnand %p355_p13, %p343_p8  ;;  %p364_p7 = por %p363_p4, %p362_p1 }
  0x3e   : > { %p358_p12 = pneg %p357_p6 }
  0x40   : > { %p365_p9 = pnand %p364_p7, %p358_p12 }
  0x42   : > { %368 = shalt.err (!%p365_p9)
}
  0x43   : > { %269 = dma.hbm_to_vmem [thread:$0]  (!%p657_p5), %s643_s1, 128, %s540_s3, [#allocation6]  }
  0x44   : > { %p658_p2 = scmp.ne.s32.totalorder %s654_s23, 0 }
  0x45   : > { %p659_p10 = scmp.ne.s32.totalorder (!%p658_p2), %s652_s20, 0 }
  0x46   : > { %134 = sbr.rel (%p658_p2) target bundleno = 107 (0x6b), region = 28 }
  0x4d   : > { %414 = dma.done.wait (%p659_p10), [#allocation3], 128  }
  0x4e   : > { %416 = vsyncadd (%p659_p10), [#allocation3], 4294967168  ;;  %p660_p8 = scmp.eq.s32.totalorder %s480_s13, 0 }
  0x50   : > { %418 = dma.done.wait (%p660_p8), [#allocation6], 128   ;;  %p661_p3 = pmov %p660_p8 }
  0x51   : > { %s152_s4 = sand.u32 1, %s431_s10   ;;  %v155_v0 = vld [vmem:[#allocation2] sm:$0xff]  ;;  %v156_v1 = vld [vmem:[#allocation5] sm:$0xff]  ;;  %s600_s20 = scalar_lea.hbm %s644_s2, %s246_s22 }
  0x52   : > { %420 = vsyncadd (%p661_p3), [#allocation6], 4294967168  ;;  %s250_s3 = sshll.u32 %s152_s4, 3  ;;  %v157_v2 = vadd.f32 %v156_v1, %v155_v0  ;;  %s160_s17 = scalar_lea.sflag [#allocation4], %s152_s4 }
  0x53   : > { %s154_s8 = scalar_lea.vmem [#allocation7], %s250_s3  ;;  %p662_p11 = scmp.ne.s32.totalorder %s651_s19, 0 }
  0x54   : > { %s173_s23 = sshll.u32 %s154_s8, 4  ;;  %158 = vst [vmem:[%s154_s8] sm:$0xff] %v157_v2  ;;  %s443_s26 = smov [#allocation7]   ;;  %s602_s23 = int_to_ptr.vmem [resolvable:$true] %s173_s23 }
  0x55   : > { %s369_s24 = scalar_lea.vmem %s602_s23, 128  ;;  %s373_s13 = sshll.u32 %s443_s26, 4  ;;  %s374_s13 = int_to_ptr.vmem [resolvable:$false] %s373_s13 }
  0x56   : > { %p370_p5 = scmp.ne.s32.totalorder %s602_s23, %s369_s24  ;;  %s375_s27 = scalar_lea.vmem %s374_s13, 256 }
  0x57   : > { %p376_p6 = scmp.lt.s32.totalorder %s602_s23, %s374_s13  ;;  %p377_p12 = scmp.lt.s32.totalorder %s375_s27, %s369_s24 }
  0x58   : > { %p371_p0 = pnand %p370_p5, %p662_p11 }
  0x59   : > { %p378_p1 = por %p377_p12, %p376_p6 }
  0x5a   : > { %p372_p13 = pneg %p371_p0 }
  0x5c   : > { %p379_p4 = pnand %p378_p1, %p372_p13 }
  0x5e   : > { %382 = shalt.err (!%p379_p4)
}
  0x5f   : > { %s383_s22 = scalar_lea.hbm %s600_s20, 128  ;;  %s387_s6 = scalar_lea.hbm %s644_s2, 256 }
  0x60   : > { %p384_p7 = scmp.ne.s32.totalorder %s600_s20, %s383_s22  ;;  %p388_p10 = scmp.lt.u32.totalorder %s600_s20, %s644_s2 }
  0x61   : > { %p389_p8 = scmp.lt.u32.totalorder %s387_s6, %s383_s22  ;;  %p391_p5 = scmp.lt.u32.totalorder %s383_s22, %s600_s20 }
  0x62   : > { %p385_p9 = pnand %p384_p7, %p662_p11 }
  0x63   : > { %p390_p3 = por %p389_p8, %p388_p10 }
  0x64   : > { %p386_p2 = pneg %p385_p9 }
  0x65   : > { %p392_p0 = por %p391_p5, %p390_p3 }
  0x67   : > { %p393_p13 = pnand %p392_p0, %p386_p2 }
  0x69   : > { %396 = shalt.err (!%p393_p13)
}
  0x6a   : > { %261 = dma.vmem_to_hbm [thread:$0]  (%p662_p11), %s602_s23, 128, %s600_s20, %s160_s17  }
  0x6b PF: > { %p276_p6 = scmp.ge.s32.totalorder %s439_s12, 2  ;;  %s185_s28 = sand.u32 1, %s427_s9  }
  0x6c   : > { %p663_p12 = scmp.ne.s32.totalorder %s653_s21, 0  ;;  %s186_s29 = scalar_lea.sflag [#allocation4], %s185_s28 }
  0x6e   : > { %p271_p1 = pnand %p276_p6, %p663_p12 }
  0x70   : > { %422 = dma.done.wait (!%p271_p1), %s186_s29, 128  }
  0x71   : > { %424 = vsyncadd (!%p271_p1), %s186_s29, 4294967168  ;;  %p14_p4 = scmp.ge.s32.totalorder %s484_s15, 4   ;;  %s664_s9 = smov %s431_s10 }
  0x72   : > { %s665_s10 = smov %s435_s11  ;;  %s666_s11 = smov %s496_s18 }
  0x73   : > { %s667_s12 = smov %s484_s15  ;;  %16 = sbr.rel (!%p14_p4) target bundleno = 5 (0x5), region = 70 }
  0x7a   :  { %191 = vsyncpa [#allocation3], 1 }
  0x7b   :  { %193 = vsyncpa [#allocation3 + $0x1], 1 }
  0x7c   :  { %194 = vsyncpa [#allocation6], 1 }
  0x7d   :  { %195 = vsyncpa [#allocation4], 1 }
  0x7e   :  { %197 = vsyncpa [#allocation4 + $0x1], 1 }

// kernel: tpu_custom_call.1
= control target key start
LH: loop header
LB: loop body
LE: loop exit
PB: predicated region body
PF: predicated region fallthrough
CT: control target
= control target key end

     0   :  { %s2872_s0 = inlined_call_operand.vmem [shape: f32[2,16,32], index: 0, kind: input, shape index: {}]   ;;  %s2873_s1 = inlined_call_operand.vmem [shape: f32[1,32], index: 1, kind: input, shape index: {}]   ;;  %s2874_s2 = inlined_call_operand.vmem [shape: f32[1,32], index: 2, kind: input, shape index: {}]   ;;  %s2875_s3 = inlined_call_operand.vmem [shape: bf16[32,32], index: 3, kind: input, shape index: {}]   ;;  %s2876_s4 = inlined_call_operand.vmem [shape: bf16[32,32], index: 4, kind: input, shape index: {}]   ;;  %s2877_s5 = inlined_call_operand.vmem [shape: bf16[32,32], index: 5, kind: input, shape index: {}]   ;;  %s2878_s6 = inlined_call_operand.hbm [shape: bf16[32,32], index: 6, kind: input, shape index: {}]   ;;  %s2879_s7 = inlined_call_operand.hbm [shape: f32[1,32], index: 7, kind: input, shape index: {}]   ;;  %s2880_s8 = inlined_call_operand.hbm [shape: f32[1,32], index: 8, kind: input, shape index: {}]   ;;  %s2881_s9 = inlined_call_operand.hbm [shape: f32[1,32], index: 9, kind: input, shape index: {}]   ;;  %s2882_s10 = inlined_call_operand.vmem [shape: bf16[32,128], index: 10, kind: input, shape index: {}]   ;;  %s2883_s11 = inlined_call_operand.vmem [shape: f32[1,128], index: 11, kind: input, shape index: {}]   ;;  %s2884_s12 = inlined_call_operand.vmem [shape: bf16[128,32], index: 12, kind: input, shape index: {}]   ;;  %s2885_s13 = inlined_call_operand.vmem [shape: f32[1,32], index: 13, kind: input, shape index: {}]   ;;  %s2886_s14 = inlined_call_operand.hbm [shape: f32[2,16,32], index: 14, kind: output, shape index: {}]  }
   0x1   :  { %2906 = sst [smem:[#allocation28_spill]] %s2875_s3 }
   0x2   :  { %2907 = sst [smem:[#allocation29_spill]] %s2879_s7 }
   0x3   :  { %2908 = sst [smem:[#allocation30_spill]] %s2882_s10 }
   0x4   :  { %2909 = sst [smem:[#allocation31_spill]] %s2883_s11 }
   0x5   :  { %2910 = sst [smem:[#allocation32_spill]] %s2884_s12 }
   0x6   :  { %2911 = sst [smem:[#allocation33_spill]] %s2885_s13 }
   0x7   :  { %2912 = sst [smem:[#allocation34_spill]] %s2886_s14 }
   0x8   :  { %19 = vsyncpa [#allocation6], 0 }
   0x9   :  { %20 = vsyncpa [#allocation9], 0 }
   0xa   :  { %21 = vsyncpa [#allocation12], 0 }
   0xb   :  { %22 = vsyncpa [#allocation7], 0 }
   0xc   :  { %24 = vsyncpa [#allocation7 + $0x1], 0  ;;  %s2434_s29 = smov 0   ;;  %s2436_s30 = smov 0  }
   0xd   :  { %s2438_s15 = smov 0   ;;  %s2440_s16 = smov 0  }
   0xe   :  { %s2442_s17 = smov 0   ;;  %s2444_s18 = smov 0  }
   0xf   :  { %s2446_s19 = smov 0   ;;  %s2448_s20 = smov 0  }
  0x10 LB: > { %2913 = sst [smem:[#allocation18_spill]] %s2309_s29  ;;  %s1730_s21 = sadd.s32 4294967295, %s2337_s20   ;;  %s2337_s20 = sphi %s2448_s20, %s30_s20   ;;  %s2333_s19 = sphi %s2446_s19, %s2951_s19   ;;  %s2329_s18 = sphi %s2444_s18, %s2950_s18   ;;  %s2325_s17 = sphi %s2442_s17, %s2949_s17   ;;  %s2321_s16 = sphi %s2440_s16, %s2948_s16   ;;  %s2317_s15 = sphi %s2438_s15, %s2947_s15   ;;  %s2313_s30 = sphi %s2436_s30, %s2953_s30   ;;  %s2309_s29 = sphi %s2434_s29, %s2952_s29  }
  0x11   : > { %2914 = sst [smem:[#allocation19_spill]] %s2317_s15  ;;  %s1731_s22 = sadd.s32 4294967294, %s2337_s20  }
  0x12   : > { %2915 = sst [smem:[#allocation20_spill]] %s2329_s18  ;;  %s39_s23 = sadd.s32 1, %s2329_s18 }
  0x13   : > { %2916 = sst [smem:[#allocation21_spill]] %s2333_s19  ;;  %s42_s24 = sadd.s32 1, %s2333_s19 }
  0x14   : > { %2917 = sst [smem:[#allocation22_spill]] %s2337_s20  ;;  %p40_p0 = scmp.ge.s32.totalorder %s39_s23, 2 }
  0x15   : > { %s350_s25 = sadd.s32 1, %s2317_s15  ;;  %p360_p1 = scmp.ne.s32.totalorder %s2317_s15, %s2313_s30 }
  0x16   : > { %p361_p2 = scmp.eq.s32.totalorder %s1730_s21, 3  ;;  %s2955_s23 = smov (%p40_p0, %s39_s23), 0 }
  0x17   : > { %2918 = sst [smem:[#allocation23_spill]] %s2955_s23  ;;  %s2957_s24 = smov (!%p40_p0, %s42_s24), %s2333_s19 }
  0x18   : > { %s346_s26 = ssub.s32 %s2329_s18, %s2955_s23  ;;  %p2486_p3 = por %p361_p2, %p360_p1 }
  0x19   : > { %p44_p4 = scmp.ge.s32.totalorder %s2957_s24, 2  ;;  %p366_p5 = scmp.ne.s32.totalorder %s2313_s30, %s2309_s29 }
  0x1a   : > { %s2919_s27 = scalar_select %p2486_p3, 1, 0 }
  0x1b   : > { %p367_p6 = scmp.eq.s32.totalorder %s1731_s22, 3  ;;  %p1732_p7 = scmp.ge.s32.totalorder %s2337_s20, 1 }
  0x1c   : > { %2920 = sst [smem:[#allocation24_spill]] %s2919_s27  ;;  %s2959_s24 = smov (%p44_p4, %s2957_s24), 0 }
  0x1d   : > { %2921 = sst [smem:[#allocation25_spill]] %s2959_s24  ;;  %p2495_p8 = por %p367_p6, %p366_p5 }
  0x1e   : > { %p374_p9 = scmp.lt.s32.totalorder %s2337_s20, 5  ;;  %s345_s14 = ssub.s32 %s2333_s19, %s2959_s24 }
  0x1f   : > { %s2922_s28 = scalar_select %p2495_p8, 1, 0 }
  0x20   : > { %s347_s13 = sor.u32 %s346_s26, %s345_s14  ;;  %p2502_p10 = pnand %p1732_p7, %p374_p9 }
  0x21   : > { %2923 = sst [smem:[#allocation26_spill]] %s2922_s28  ;;  %p348_p11 = scmp.eq.s32.totalorder %s347_s13, 0 }
  0x22   : > { %s2924_s23 = scalar_select %p2502_p10, 1, 0 }
  0x23   : > { %p2506_p12 = scmp.eq.s32.totalorder %s1730_s21, 0  ;;  %p1968_p13 = pneg %p2502_p10 }
  0x24   : > { %s2513_s22 = scalar_select %p348_p11, %s2317_s15, %s350_s25  }
  0x25   : > { %s2925_s18 = scalar_select %p2506_p12, 1, 0 }
  0x26   : > { %2926 = sst [smem:[#allocation27_spill]] %s2513_s22  ;;  %p2517_p0 = pnand %p2506_p12, %p1968_p13 }
  0x27   : > { %s2339_s14 = smov [#allocation8]   ;;  %s2928_s7 = sld [smem:[#allocation29_spill]] }
  0x28   : > { %s415_s26 = sshll.u32 %s2339_s14, 4  ;;  %p2529_p2 = pneg %p2517_p0  ;;  %s416_s26 = int_to_ptr.vmem [resolvable:$true] %s415_s26 }
  0x2d   : > { %s2119_s21 = scalar_lea.hbm %s2928_s7, 16 }
  0x2e   : > { %p2120_p1 = scmp.ne.s32.totalorder %s2928_s7, %s2119_s21  ;;  %p2126_p6 = scmp.lt.u32.totalorder %s2119_s21, %s2928_s7 }
  0x30   : > { %p2122_p4 = pnand %p2529_p2, %p2120_p1 }
  0x32   : > { %p2123_p5 = pneg %p2122_p4 }
  0x34   : > { %p2128_p7 = pnand %p2126_p6, %p2123_p5 }
  0x36   : > { %2131 = shalt.err (!%p2128_p7)
}
  0x37   : > { %s2132_s24 = scalar_lea.vmem %s416_s26, 16  ;;  %s2139_s29 = scalar_lea.vmem %s416_s26, 32 }
  0x38   : > { %p2133_p9 = scmp.ne.s32.totalorder %s416_s26, %s2132_s24  ;;  %p2140_p8 = scmp.lt.s32.totalorder %s416_s26, %s416_s26 }
  0x39   : > { %p2141_p3 = scmp.lt.s32.totalorder %s2139_s29, %s2132_s24 }
  0x3a   : > { %p2135_p11 = pnand %p2133_p9, %p2529_p2 }
  0x3b   : > { %p2142_p12 = por %p2141_p3, %p2140_p8 }
  0x3c   : > { %p2136_p13 = pneg %p2135_p11 }
  0x3e   : > { %p2143_p10 = pnand %p2142_p12, %p2136_p13 }
  0x40   : > { %2146 = shalt.err (!%p2143_p10)
}
  0x41   : > { %1974 = dma.hbm_to_vmem [thread:$0]  (!%p2517_p0), %s2928_s7, 16, %s416_s26, [#allocation9]  }
  0x42   : > { %s2340_s22 = smov [#allocation5]   ;;  %s2147_s20 = scalar_lea.hbm %s2878_s6, 256 }
  0x43   : > { %s401_s21 = sshll.u32 %s2340_s22, 4  ;;  %p2148_p3 = scmp.ne.s32.totalorder %s2878_s6, %s2147_s20  ;;  %s402_s21 = int_to_ptr.vmem [resolvable:$true] %s401_s21 }
  0x44   : > { %p2154_p12 = scmp.lt.u32.totalorder %s2147_s20, %s2878_s6 }
  0x45   : > { %p2150_p8 = pnand %p2148_p3, %p2529_p2 }
  0x47   : > { %p2151_p10 = pneg %p2150_p8 }
  0x49   : > { %p2156_p1 = pnand %p2154_p12, %p2151_p10 }
  0x4b   : > { %2159 = shalt.err (!%p2156_p1)
}
  0x4c   : > { %s2160_s26 = scalar_lea.vmem %s402_s21, 256  ;;  %p2168_p7 = scmp.lt.s32.totalorder %s402_s21, %s402_s21 }
  0x4d   : > { %p2161_p4 = scmp.ne.s32.totalorder %s402_s21, %s2160_s26  ;;  %p2169_p9 = scmp.lt.s32.totalorder %s2160_s26, %s2160_s26 }
  0x4f   : > { %p2163_p5 = pnand %p2161_p4, %p2529_p2  ;;  %p2170_p11 = por %p2169_p9, %p2168_p7 }
  0x51   : > { %p2164_p6 = pneg %p2163_p5 }
  0x53   : > { %p2171_p13 = pnand %p2170_p11, %p2164_p6 }
  0x55   : > { %2174 = shalt.err (!%p2171_p13)
}
  0x56   : > { %s2341_s11 = smov 64   ;;  %s2342_s15 = smov 4  }
  0x57   : > { %1971 = dma.hbm_to_vmem [thread:$0]  (!%p2517_p0), %s2878_s6, 256, %s402_s21, [#allocation6], %s2341_s11, %s2341_s11, %s2342_s15  }
  0x58   : > { %s2343_s19 = smov [#allocation10]   ;;  %s2344_s22 = smov [#allocation11]  }
  0x59   : > { %s426_s13 = sshll.u32 %s2343_s19, 4  ;;  %s437_s14 = sshll.u32 %s2344_s22, 4  ;;  %s427_s13 = int_to_ptr.vmem [resolvable:$true] %s426_s13  ;;  %s438_s14 = int_to_ptr.vmem [resolvable:$true] %s437_s14 }
  0x5a   : > { %s2175_s26 = scalar_lea.hbm %s2880_s8, 16 }
  0x5b   : > { %p2176_p3 = scmp.ne.s32.totalorder %s2880_s8, %s2175_s26  ;;  %p2182_p12 = scmp.lt.u32.totalorder %s2175_s26, %s2880_s8 }
  0x5d   : > { %p2178_p8 = pnand %p2176_p3, %p2529_p2 }
  0x5f   : > { %p2179_p10 = pneg %p2178_p8 }
  0x61   : > { %p2184_p1 = pnand %p2182_p12, %p2179_p10 }
  0x63   : > { %2187 = shalt.err (!%p2184_p1)
}
  0x64   : > { %s2188_s21 = scalar_lea.vmem %s427_s13, 16  ;;  %s2195_s11 = scalar_lea.vmem %s427_s13, 32 }
  0x65   : > { %p2189_p4 = scmp.ne.s32.totalorder %s427_s13, %s2188_s21  ;;  %p2196_p7 = scmp.lt.s32.totalorder %s427_s13, %s427_s13 }
  0x66   : > { %p2197_p9 = scmp.lt.s32.totalorder %s2195_s11, %s2188_s21 }
  0x67   : > { %p2191_p5 = pnand %p2189_p4, %p2529_p2 }
  0x68   : > { %p2198_p11 = por %p2197_p9, %p2196_p7 }
  0x69   : > { %p2192_p6 = pneg %p2191_p5 }
  0x6b   : > { %p2199_p13 = pnand %p2198_p11, %p2192_p6 }
  0x6d   : > { %2202 = shalt.err (!%p2199_p13)
}
  0x6e   : > { %1977 = dma.hbm_to_vmem [thread:$0]  (!%p2517_p0), %s2880_s8, 16, %s427_s13, [#allocation9]  }
  0x6f   : > { %s2203_s15 = scalar_lea.hbm %s2881_s9, 16 }
  0x70   : > { %p2204_p3 = scmp.ne.s32.totalorder %s2881_s9, %s2203_s15  ;;  %p2210_p12 = scmp.lt.u32.totalorder %s2203_s15, %s2881_s9 }
  0x72   : > { %p2206_p8 = pnand %p2204_p3, %p2529_p2 }
  0x74   : > { %p2207_p10 = pneg %p2206_p8 }
  0x76   : > { %p2212_p1 = pnand %p2210_p12, %p2207_p10 }
  0x78   : > { %2215 = shalt.err (!%p2212_p1)
}
  0x79   : > { %s2216_s24 = scalar_lea.vmem %s438_s14, 16  ;;  %s2223_s13 = scalar_lea.vmem %s438_s14, 32 }
  0x7a   : > { %p2217_p4 = scmp.ne.s32.totalorder %s438_s14, %s2216_s24  ;;  %p2224_p7 = scmp.lt.s32.totalorder %s438_s14, %s438_s14 }
  0x7b   : > { %p2225_p9 = scmp.lt.s32.totalorder %s2223_s13, %s2216_s24 }
  0x7c   : > { %p2219_p5 = pnand %p2217_p4, %p2529_p2 }
  0x7d   : > { %p2226_p11 = por %p2225_p9, %p2224_p7 }
  0x7e   : > { %p2220_p6 = pneg %p2219_p5 }
  0x80   : > { %p2227_p13 = pnand %p2226_p11, %p2220_p6 }
  0x82   : > { %2230 = shalt.err (!%p2227_p13)
}
  0x83   : > { %1980 = dma.hbm_to_vmem [thread:$0]  (!%p2517_p0), %s2881_s9, 16, %s438_s14, [#allocation12]  }
  0x84   : > { %p2930_p3 = scmp.ne.s32.totalorder %s2924_s23, 0 }
  0x85   : > { %p2931_p8 = scmp.ne.s32.totalorder (!%p2930_p3), %s2925_s18, 0 }
  0x86   : > { %470 = sbr.rel (%p2930_p3) target bundleno = 3324 (0xcfc), region = 76 }
  0x8d   : > { %2292 = dma.done.wait (%p2931_p8), [#allocation6], 256  }
  0x8e   : > { %2294 = vsyncadd (%p2931_p8), [#allocation6], 4294967040 }
  0x8f   : > { %2296 = dma.done.wait (%p2931_p8), [#allocation9], 32  }
  0x90   : > { %2298 = vsyncadd (%p2931_p8), [#allocation9], 4294967264 }
  0x91   : > { %2300 = dma.done.wait (%p2931_p8), [#allocation12], 16  }
  0x92   : > { %2302 = vsyncadd (%p2931_p8), [#allocation12], 4294967280  ;;  %s525_s23 = sand.u32 1, %s2313_s30   ;;  %p528_p0 = scmp.lt.s32.totalorder %s2325_s17, 1 }
  0x93   : > { %s2617_s28 = sshll.u32 %s525_s23, 3  ;;  %p1746_p2 = scmp.ne.s32.totalorder %s2321_s16, 0 }
  0x94   : > { %s529_s25 = scalar_select %p528_p0, %s2325_s17, 1 }
  0x95   : > { %s527_s12 = scalar_lea.vmem [#allocation13], %s2617_s28  ;;  %537 = sbr.rel (%p1746_p2) target bundleno = 816 (0x330), region = 96  ;;  %vm542_vm0 = vcmask (!%p1746_p2), 261120   ;;  %v2077_v14 = vld [vmem:[%s2876_s4] sm:$0xff] (!%p1746_p2)   ;;  %v2345_v16 = vmov (!%p1746_p2), 0.0   ;;  %v2079_v17 = vld [vmem:[%s2876_s4 + $0x8] sm:$0xff] (!%p1746_p2)  }
  0x96   : > { %s1797_s14 = sshll.u32 %s529_s25, 4  ;;  %v2078_v15 = vld [vmem:[%s2877_s5] sm:$0xff] (!%p1746_p2)   ;;  %1842 = vmatprep.subr.bf16.mxu0 (!%p1746_p2), %v2345_v16  ;;  %1850 = vmatprep.subr.bf16.mxu1 (!%p1746_p2), %v2345_v16  ;;  %v2080_v18 = vld [vmem:[%s2877_s5 + $0x8] sm:$0xff] (!%p1746_p2)   ;;  %vm2346_vm1 = vmmov (!%p1746_p2), 0   ;;  %vm705_vm2 = vcmask (!%p1746_p2), 64512   ;;  %s2347_s25 = smov (!%p1746_p2), 120  }
  0x97   : > { %s2623_s7 = scalar_lea.vmem %s2872_s0, %s1797_s14  ;;  %1843 = vmatpush3.bf16.msra.mxu0 (!%p1746_p2), %v2077_v14  ;;  %1851 = vmatpush3.bf16.msra.mxu1 (!%p1746_p2), %v2078_v15  ;;  %v1747_v27 = vld [vmem:[%s2873_s1] ss:$0 sm:$0xff] (!%p1746_p2)  ;;  %s2348_s14 = smov (!%p1746_p2), 112  }
  0x98   : > { %v538_v0 = vld [vmem:[%s2623_s7] sm:$0xff] (!%p1746_p2)  ;;  %v539_v1 = vld [vmem:[%s2623_s7 + $0x8] sm:$0xff] (!%p1746_p2)  ;;  %1844 = vmatprep.subr.bf16.mxu0 (!%p1746_p2), %v2345_v16  ;;  %1852 = vmatprep.subr.bf16.mxu1 (!%p1746_p2), %v2345_v16  ;;  %s2349_s21 = smov (!%p1746_p2), 104  }
  0x99   : > { %v543_v2 = vsel (!%p1746_p2), %vm542_vm0, %v538_v0, 0.0  ;;  %v546_v3 = vsel (!%p1746_p2), %vm542_vm0, %v539_v1, 0.0  ;;  %1846 = vmatprep.mubr.msk.bf16.mxu0 (!%p1746_p2), %vm2346_vm1, %v2345_v16  ;;  %1854 = vmatprep.mubr.msk.bf16.mxu1 (!%p1746_p2), %vm2346_vm1, %v2345_v16  ;;  %v1748_v31 = vld [vmem:[%s2874_s2] ss:$0 sm:$0xff] (!%p1746_p2) }
  0x9a   : > { %544 = vadd.xlane.f32.xlu0 (!%p1746_p2), %v543_v2 }
  0x9b   : > { %1845 = vmatpush3.bf16.msra.mxu0 (!%p1746_p2), %v2079_v17  ;;  %1853 = vmatpush3.bf16.msra.mxu1 (!%p1746_p2), %v2080_v18 }
  0x9e   : > { %547 = vadd.xlane.f32.xlu0 %v546_v3 }
 0x127   : > { %v545_v4 = vpop.xlane.xlu0 %544 }
 0x128   : > { %v550_v5 = vmul.f32 0.03125, %v545_v4 }
 0x12a   : > { %v552_v6 = vsub.f32 %v538_v0, %v550_v5 }
 0x12b   : > { %v548_v7 = vpop.xlane.xlu0 %547 }
 0x12c   : > { %v551_v8 = vmul.f32 0.03125, %v548_v7  ;;  %v554_v9 = vmul.f32 %v552_v6, %v552_v6 }
 0x12e   : > { %v553_v10 = vsub.f32 %v539_v1, %v551_v8  ;;  %v556_v11 = vsel %vm542_vm0, %v554_v9, 0.0 }
 0x12f   : > { %557 = vadd.xlane.f32.xlu1 %v556_v11 }
 0x130   : > { %v555_v12 = vmul.f32 %v553_v10, %v553_v10 }
 0x132   : > { %v559_v13 = vsel %vm542_vm0, %v555_v12, 0.0 }
 0x133   : > { %560 = vadd.xlane.f32.xlu1 %v559_v13 }
 0x1bc   : > { %v558_v19 = vpop.xlane.xlu1 %557 }
 0x1bd   : > { %v562_v20 = vmul.f32 0.03125, %v558_v19 }
 0x1bf   : > { %v564_v21 = vadd.f32 1e-05, %v562_v20 }
 0x1c0   : > { %v561_v22 = vpop.xlane.xlu1 %560 }
 0x1c1   : > { %2081 = vrsqrt.f32 %v564_v21  ;;  %v563_v23 = vmul.f32 0.03125, %v561_v22 }
 0x1c3   : > { %v565_v24 = vadd.f32 1e-05, %v563_v23 }
 0x1c5   : > { %2083 = vrsqrt.f32 %v565_v24 }
 0x1cb   : > { %v2082_v25 = vpop.eup %2081 }
 0x1cc   : > { %v568_v26 = vmul.f32 %v2082_v25, %v552_v6 }
 0x1ce   : > { %v576_v30 = vmul.f32 %v1747_v27, %v568_v26 }
 0x1cf   : > { %v2084_v28 = vpop.eup %2083 }
 0x1d0   : > { %v569_v29 = vmul.f32 %v2084_v28, %v553_v10  ;;  %v584_v33 = vadd.f32 %v1748_v31, %v576_v30 }
 0x1d2   : > { %v577_v32 = vmul.f32 %v1747_v27, %v569_v29 }
 0x1d4   : > { %v585_v34 = vadd.f32 %v1748_v31, %v577_v32 }
 0x1d6   : > { %v586_v35 = vpack.c.bf16 %v585_v34, %v584_v33 }
 0x1d8   : > { %1847 = vmatmul.mubr.msk.bf16.vlgmr.msra.gmra.mrb[0].mxu0 %vm542_vm0, %v586_v35  ;;  %1855 = vmatmul.mubr.msk.bf16.vlgmr.msra.gmra.mrb[0].mxu1 %vm542_vm0, %v586_v35 }
 0x2ab   : > { %v640_v36 = vpop.f32.mrb[0].mxu0  ;;  %v697_v37 = vpop.f32.mrb[0].mxu1 }
 0x2ac   : > { %v1848_v38 = vpop.f32.mrb[1].mxu0  ;;  %v1856_v39 = vpop.f32.mrb[1].mxu1 }
 0x2ad   : > { %v643_v40 = vpop.f32.mrb[2].mxu0  ;;  %v700_v41 = vpop.f32.mrb[2].mxu1 }
 0x2ae   : > { %v704_v42 = vpack.c.bf16 %v643_v40, %v640_v36  ;;  %v707_v43 = vpack.c.bf16 %v700_v41, %v697_v37  ;;  %v1849_v44 = vpop.f32.mrb[3].mxu0  ;;  %v1857_v45 = vpop.f32.mrb[3].mxu1 }
 0x2b0   : > { %706 = vst.msk [vmem:[#allocation2] sm:$0xff] %vm705_vm2, %v704_v42  ;;  %709 = vst.msk [vmem:[#allocation2 + $0x20] sm:$0xff] %vm705_vm2, %v707_v43  ;;  %717 = vrot.lane.b32.xlu1 %v707_v43, %s2347_s25  ;;  %711 = vrot.lane.b32.xlu0 %v704_v42, %s2347_s25 }
 0x2b4   : > { %722 = vrot.lane.b32.xlu1 %v704_v42, %s2348_s14  ;;  %732 = vrot.lane.b32.xlu0 %v704_v42, %s2349_s21 }
 0x2b8   : > { %727 = vrot.lane.b32.xlu1 %v707_v43, %s2348_s14 }
 0x2bc   : > { %737 = vrot.lane.b32.xlu1 %v707_v43, %s2349_s21 }
 0x322   : > { %v718_v46 = vpop.permute.xlu1 %717  ;;  %v712_v47 = vpop.permute.xlu0 %711 }
 0x323   : > { %721 = vst.msk [vmem:[#allocation2 + $0x28] sm:$0xff] %vm705_vm2, %v718_v46  ;;  %715 = vst.msk [vmem:[#allocation2 + $0x8] sm:$0xff] %vm705_vm2, %v712_v47 }
 0x326   : > { %v723_v48 = vpop.permute.xlu1 %722  ;;  %v733_v49 = vpop.permute.xlu0 %732 }
 0x327   : > { %726 = vst.msk [vmem:[#allocation2 + $0x10] sm:$0xff] %vm705_vm2, %v723_v48  ;;  %736 = vst.msk [vmem:[#allocation2 + $0x18] sm:$0xff] %vm705_vm2, %v733_v49 }
 0x32a   : > { %v728_v50 = vpop.permute.xlu1 %727 }
 0x32b   : > { %731 = vst.msk [vmem:[#allocation2 + $0x30] sm:$0xff] %vm705_vm2, %v728_v50 }
 0x32e   : > { %v738_v51 = vpop.permute.xlu1 %737 }
 0x32f   : > { %741 = vst.msk [vmem:[#allocation2 + $0x38] sm:$0xff] %vm705_vm2, %v738_v51 }
 0x330 PF: > { %s1755_s11 = sshll.u32 %s2321_s16, 3  ;;  %vm747_vm3 = vcmask 261120   ;;  %s2932_s15 = sld [smem:[#allocation28_spill]]  ;;  %v2350_v60 = vmov 0.0   ;;  %vm2351_vm4 = vmmov 0   ;;  %v862_v8 = vld [vmem:[#allocation2] sm:$0xff]  ;;  %v1051_v29 = vlaneseq }
 0x331   : > { %s743_s18 = scalar_lea.vmem %s2623_s7, %s1755_s11  ;;  %1858 = vmatprep.subr.bf16.mxu0 %v2350_v60  ;;  %1862 = vmatprep.mubr.msk.bf16.mxu0 %vm2351_vm4, %v2350_v60  ;;  %v1756_v2 = vld [vmem:[%s2873_s1] ss:$0 sm:$0xff]  ;;  %vm866_vm5 = vcmask 64512   ;;  %v864_v10 = vld [vmem:[#allocation2 + $0x10] sm:$0xff]  ;;  %vm838_vm6 = vcmask 60416   ;;  %s2352_s29 = smov 104   ;;  %v1053_v31 = vstv %s1755_s11 }
 0x332   : > { %v2665_v52 = vld [vmem:[%s743_s18] sm:$0xff]  ;;  %1878 = vmatprep.subr.bf16.mxu1 %v2350_v60  ;;  %1880 = vmatprep.mubr.msk.bf16.mxu1 %vm2351_vm4, %v2350_v60  ;;  %v871_v9 = vsel %vm866_vm5, %v862_v8, 0  ;;  %v963_v11 = vsel %vm866_vm5, %v864_v10, 0  ;;  %s2353_s26 = smov 120   ;;  %v863_v18 = vld [vmem:[#allocation2 + $0x8] sm:$0xff]  ;;  %s2354_s25 = smov 112  }
 0x333   : > { %v748_v53 = vsel %vm747_vm3, %v2665_v52, 0.0  ;;  %v1757_v4 = vld [vmem:[%s2874_s2] ss:$0 sm:$0xff]  ;;  %1879 = vmatpush3.bf16.xpose.msra.mxu1 %v963_v11  ;;  %v917_v19 = vsel %vm866_vm5, %v863_v18, 0  ;;  %v865_v24 = vld [vmem:[#allocation2 + $0x18] sm:$0xff]  ;;  %v1052_v30 = vshrl.u32 %v1051_v29, 7 }
 0x334   : > { %749 = vadd.xlane.f32.xlu0 %v748_v53  ;;  %1890 = vmatprep.subr.bf16.mxu1 %v2350_v60  ;;  %v1009_v25 = vsel %vm866_vm5, %v865_v24, 0  ;;  %v1056_v33 = vand.u32 127, %v1051_v29  ;;  %vm1064_vm8 = vcmask 130048   ;;  %s2355_s14 = smov 8   ;;  %s2356_s21 = smov 16   ;;  %vm1299_vm9 = vcmask 126016  }
 0x335   : > { %v1054_v32 = vadd.s32 %v1053_v31, %v1052_v30  ;;  %s2357_s11 = smov 24   ;;  %vm1308_vm10 = vcmask 191616   ;;  %vm1317_vm11 = vcmask 257216   ;;  %s2934_s10 = sld [smem:[#allocation30_spill]] }
 0x336   : > { %s2933_s27 = smov %s2932_s15  ;;  %v2085_v59 = vld [vmem:[%s2932_s15] sm:$0xff]   ;;  %v1117_v29 = vld [vmem:[#allocation2 + $0x38] sm:$0xff]  ;;  %s2935_s22 = sld [smem:[#allocation32_spill]] }
 0x337   : > { %1859 = vmatpush3.bf16.msra.mxu0 %v2085_v59  ;;  %v2086_v61 = vld [vmem:[%s2933_s27 + $0x8] sm:$0xff]   ;;  %vm1057_vm7 = vcmp.le.s32.totalorder %v1056_v33, %v1054_v32  ;;  %s2938_s18 = sld [smem:[#allocation24_spill]]  ;;  %s1615_s15 = sshll.u32 %s527_s12, 4  ;;  %s2816_s15 = int_to_ptr.vmem [resolvable:$true] %s1615_s15 }
 0x338   : > { %1860 = vmatprep.subr.bf16.mxu0 %v2350_v60  ;;  %s2939_s19 = sld [smem:[#allocation34_spill]]  ;;  %s2231_s13 = scalar_lea.vmem %s2816_s15, 128 }
 0x339   : > { %p2232_p10 = scmp.ne.s32.totalorder %s2816_s15, %s2231_s13 }
 0x33b   : > { %1861 = vmatpush3.bf16.msra.mxu0 %v2086_v61 }
 0x33c   : > { %1866 = vmatprep.subr.bf16.mxu0 %v2350_v60 }
 0x33d   : > { %p2941_p12 = scmp.ne.s32.totalorder %s2938_s18, 0 }
 0x33e   : > { %s2940_s24 = smov %s2939_s19 }
 0x33f   : > { %p2233_p1 = pnand %p2232_p10, %p2941_p12 }
 0x341   : > { %p2234_p4 = pneg %p2233_p1 }
 0x3c1   : > { %v750_v54 = vpop.xlane.xlu0 %749 }
 0x3c2   : > { %v752_v55 = vmul.f32 0.03125, %v750_v54 }
 0x3c4   : > { %v753_v56 = vsub.f32 %v2665_v52, %v752_v55 }
 0x3c6   : > { %v754_v57 = vmul.f32 %v753_v56, %v753_v56 }
 0x3c8   : > { %v755_v58 = vsel %vm747_vm3, %v754_v57, 0.0 }
 0x3c9   : > { %756 = vadd.xlane.f32.xlu0 %v755_v58 }
 0x456   : > { %v757_v62 = vpop.xlane.xlu0 %756 }
 0x457   : > { %v758_v63 = vmul.f32 0.03125, %v757_v62 }
 0x459   : > { %v759_v0 = vadd.f32 1e-05, %v758_v63 }
 0x45b   : > { %2099 = vrsqrt.f32 %v759_v0 }
 0x465   : > { %v2100_v1 = vpop.eup %2099 }
 0x466   : > { %v761_v3 = vmul.f32 %v2100_v1, %v753_v56  ;;  %v1114_v1 = vld [vmem:[#allocation2 + $0x20] sm:$0xff] }
 0x468   : > { %v768_v5 = vmul.f32 %v1756_v2, %v761_v3 }
 0x46a   : > { %v775_v6 = vadd.f32 %v1757_v4, %v768_v5 }
 0x46c   : > { %v776_v7 = vpack.c.bf16 %v775_v6, %v775_v6 }
 0x46e   : > { %1863 = vmatmul.mubr.msk.bf16.vlgmr.msra.gmra.mrb[0].mxu0 %vm747_vm3, %v776_v7 }
 0x46f   : > { %1868 = vmatprep.mubr.msk.bf16.mxu0 %vm2351_vm4, %v2350_v60  ;;  %1867 = vmatpush3.bf16.xpose.msra.mxu0 %v871_v9 }
 0x470   : > { %1872 = vmatprep.subr.bf16.mxu0 %v2350_v60 }
 0x541   : > { %v830_v12 = vpop.f32.mrb[0].mxu0 }
 0x542   : > { %v836_v13 = vmul.f32 0.17677669, %v830_v12  ;;  %v1864_v14 = vpop.f32.mrb[1].mxu0 }
 0x543   : > { %v833_v15 = vpop.f32.mrb[2].mxu0 }
 0x544   : > { %v837_v16 = vpack.c.bf16 %v836_v13, %v836_v13  ;;  %v1865_v17 = vpop.f32.mrb[3].mxu0 }
 0x545   : > { %v1115_v17 = vld [vmem:[#allocation2 + $0x28] sm:$0xff] }
 0x546   : > { %839 = vst.msk [vmem:[#allocation3] sm:$0xf] %vm838_vm6, %v837_v16  ;;  %853 = vrot.lane.b32.xlu0 %v837_v16, %s2352_s29  ;;  %843 = vrot.lane.b32.xlu1 %v837_v16, %s2353_s26  ;;  %s2936_s29 = sld [smem:[#allocation31_spill]]  ;;  %s1793_s26 = sshll.u32 %s2325_s17, 1 }
 0x54a   : > { %848 = vrot.lane.b32.xlu1 %v837_v16, %s2354_s25  ;;  %s1611_s25 = sadd.s32 %s2321_s16, %s1793_s26  ;;  %s1600_s16 = scalar_lea.sflag [#allocation7], %s525_s23 }
 0x54b   : > { %s1794_s3 = sshll.u32 %s1611_s25, 7 }
 0x54c   : > { %s2814_s17 = scalar_lea.hbm %s2939_s19, %s1794_s3 }
 0x54d   : > { %v858_v20 = vld [vmem:[#allocation3] sm:$0xf] }
 0x54e   : > { %1869 = vmatmul.mubr.msk.bf16.vlgmr.msra.gmra.mrb[4].mxu0 %vm866_vm5, %v858_v20 }
 0x54f   : > { %1873 = vmatpush3.bf16.xpose.msra.mxu0 %v917_v19  ;;  %1874 = vmatprep.mubr.msk.bf16.mxu0 %vm2351_vm4, %v2350_v60 }
 0x550   : > { %1884 = vmatprep.subr.bf16.mxu0 %v2350_v60 }
 0x5b8   : > { %v854_v21 = vpop.permute.xlu0 %853  ;;  %v844_v22 = vpop.permute.xlu1 %843 }
 0x5b9   : > { %857 = vst.msk [vmem:[#allocation3 + $0xc] sm:$0xf] %vm838_vm6, %v854_v21  ;;  %847 = vst.msk [vmem:[#allocation3 + $0x4] sm:$0xf] %vm838_vm6, %v844_v22  ;;  %v1116_v22 = vld [vmem:[#allocation2 + $0x30] sm:$0xff] }
 0x5bc   : > { %v849_v23 = vpop.permute.xlu1 %848 }
 0x5bd   : > { %852 = vst.msk [vmem:[#allocation3 + $0x8] sm:$0xf] %vm838_vm6, %v849_v23 }
 0x5c0   : > { %v859_v26 = vld [vmem:[#allocation3 + $0x4] sm:$0xf]  ;;  %v861_v28 = vld [vmem:[#allocation3 + $0xc] sm:$0xf] }
 0x5c1   : > { %1875 = vmatmul.mubr.msk.bf16.vlgmr.msra.gmra.mrb[8].mxu0 %vm866_vm5, %v859_v26 }
 0x5c2   : > { %1885 = vmatpush3.bf16.xpose.msra.mxu0 %v1009_v25  ;;  %1886 = vmatprep.mubr.msk.bf16.mxu0 %vm2351_vm4, %v2350_v60 }
 0x5c3   : > { %1896 = vmatprep.subr.bf16.mxu0 %v2350_v60 }
 0x5c4   : > { %v860_v27 = vld [vmem:[#allocation3 + $0x8] sm:$0xf] }
 0x5c5   : > { %1881 = vmatmul.mubr.msk.bf16.vlgmr.msra.gmra.mrb[0].mxu1 %vm866_vm5, %v860_v27 }
 0x5c6   : > { %1892 = vmatprep.mubr.msk.bf16.mxu1 %vm2351_vm4, %v2350_v60  ;;  %1891 = vmatpush3.bf16.msra.mxu1 %v1114_v1 }
 0x5c7   : > { %1902 = vmatprep.subr.bf16.mxu1 %v2350_v60 }
 0x5c9   : > { %1887 = vmatmul.mubr.msk.bf16.vlgmr.msra.gmra.mrb[12].mxu0 %vm866_vm5, %v861_v28 }
 0x5ca   : > { %1898 = vmatprep.mubr.msk.bf16.mxu0 %vm2351_vm4, %v2350_v60  ;;  %1897 = vmatpush3.bf16.msra.mxu0 %v1115_v17  ;;  %v2094_v17 = vld [vmem:[%s2935_s22 + $0x18] sm:$0xff]  }
 0x5cb   : > { %1908 = vmatprep.subr.bf16.mxu0 %v2350_v60 }
 0x621   : > { %v907_v34 = vpop.f32.mrb[4].mxu0 }
 0x622   : > { %v1060_v35 = vsel %vm1057_vm7, %v907_v34, -1e+30  ;;  %v1870_v36 = vpop.f32.mrb[5].mxu0 }
 0x623   : > { %v910_v37 = vpop.f32.mrb[6].mxu0  ;;  %v1065_v38 = vsel %vm1064_vm8, %v1060_v35, -inf }
 0x624   : > { %1066 = vmax.xlane.f32.xlu1 %v1065_v38  ;;  %v1871_v39 = vpop.f32.mrb[7].mxu0 }
 0x694   : > { %v953_v40 = vpop.f32.mrb[8].mxu0 }
 0x695   : > { %v1061_v41 = vsel %vm1057_vm7, %v953_v40, -1e+30  ;;  %v1876_v42 = vpop.f32.mrb[9].mxu0 }
 0x696   : > { %v956_v43 = vpop.f32.mrb[10].mxu0  ;;  %v1068_v44 = vsel %vm1064_vm8, %v1061_v41, -inf  ;;  %v2088_v42 = vld [vmem:[#allocation5 + $0x8] sm:$0xff]  }
 0x697   : > { %1069 = vmax.xlane.f32.xlu0 %v1068_v44  ;;  %v1877_v45 = vpop.f32.mrb[11].mxu0 }
 0x698   : > { %v999_v46 = vpop.f32.mrb[0].mxu1 }
 0x699   : > { %v1062_v47 = vsel %vm1057_vm7, %v999_v46, -1e+30  ;;  %v1882_v48 = vpop.f32.mrb[1].mxu1 }
 0x69a   : > { %v1002_v49 = vpop.f32.mrb[2].mxu1  ;;  %v1071_v50 = vsel %vm1064_vm8, %v1062_v47, -inf }
 0x69b   : > { %v1883_v51 = vpop.f32.mrb[3].mxu1  ;;  %1072 = vmax.xlane.f32.xlu1 %v1071_v50 }
 0x69c   : > { %v1045_v53 = vpop.f32.mrb[12].mxu0 }
 0x69d   : > { %v1063_v54 = vsel %vm1057_vm7, %v1045_v53, -1e+30  ;;  %v1888_v55 = vpop.f32.mrb[13].mxu0 }
 0x69e   : > { %v1048_v56 = vpop.f32.mrb[14].mxu0  ;;  %v1074_v57 = vsel %vm1064_vm8, %v1063_v54, -inf }
 0x69f   : > { %1075 = vmax.xlane.f32.xlu1 %v1074_v57  ;;  %v1889_v58 = vpop.f32.mrb[15].mxu0 }
 0x6b1   : > { %v1067_v59 = vpop.xlane.xlu1 %1066 }
 0x6b2   : > { %v1077_v61 = vsub.f32 %v1060_v35, %v1067_v59 }
 0x6b4   : > { %v1081_v62 = vmul.f32 1.442695, %v1077_v61 }
 0x6b6   : > { %2101 = vpow2.f32 %v1081_v62 }
 0x6c0   : > { %v2102_v63 = vpop.eup %2101 }
 0x6c1   : > { %v1089_v0 = vsel %vm1064_vm8, %v2102_v63, 0.0 }
 0x6c2   : > { %1090 = vadd.xlane.f32.xlu1 %v1089_v0  ;;  %v1773_v0 = vld [vmem:[#allocation8] ss:$0 sm:$0xff] }
 0x6c3   : > { %v1326_v1 = vadd.f32 %v1773_v0, %v2665_v52  ;;  %v2089_v52 = vld [vmem:[%s2934_s10] sm:$0xff]  }
 0x724   : > { %v1070_v2 = vpop.xlane.xlu0 %1069 }
 0x725   : > { %v1078_v3 = vsub.f32 %v1061_v41, %v1070_v2  ;;  %v2087_v41 = vld [vmem:[#allocation5] sm:$0xff]  }
 0x727   : > { %v1083_v4 = vmul.f32 1.442695, %v1078_v3 }
 0x728   : > { %v1073_v5 = vpop.xlane.xlu1 %1072 }
 0x729   : > { %2103 = vpow2.f32 %v1083_v4  ;;  %v1079_v6 = vsub.f32 %v1062_v47, %v1073_v5 }
 0x72b   : > { %v1085_v7 = vmul.f32 1.442695, %v1079_v6 }
 0x72c   : > { %v1076_v8 = vpop.xlane.xlu1 %1075 }
 0x72d   : > { %2105 = vpow2.f32 %v1085_v7  ;;  %v1080_v9 = vsub.f32 %v1063_v54, %v1076_v8 }
 0x72f   : > { %v1087_v10 = vmul.f32 1.442695, %v1080_v9 }
 0x731   : > { %2107 = vpow2.f32 %v1087_v10 }
 0x733   : > { %v2104_v11 = vpop.eup %2103 }
 0x734   : > { %v1092_v12 = vsel %vm1064_vm8, %v2104_v11, 0.0 }
 0x735   : > { %1093 = vadd.xlane.f32.xlu1 %v1092_v12 }
 0x737   : > { %v2106_v13 = vpop.eup %2105 }
 0x738   : > { %v1095_v14 = vsel %vm1064_vm8, %v2106_v13, 0.0 }
 0x739   : > { %1096 = vadd.xlane.f32.xlu1 %v1095_v14  ;;  %v2091_v14 = vld [vmem:[%s2935_s22] sm:$0xff]  }
 0x73b   : > { %v2108_v15 = vpop.eup %2107 }
 0x73c   : > { %v1098_v16 = vsel %vm1064_vm8, %v2108_v15, 0.0 }
 0x73d   : > { %1099 = vadd.xlane.f32.xlu0 %v1098_v16  ;;  %v2093_v16 = vld [vmem:[%s2935_s22 + $0x10] sm:$0xff]  }
 0x74f   : > { %v1091_v18 = vpop.xlane.xlu1 %1090 }
 0x750   : > { %2109 = vrcp.f32 %v1091_v18  ;;  %v2095_v18 = vld [vmem:[%s2935_s22 + $0x20] sm:$0xff]  }
 0x75a   : > { %v2110_v19 = vpop.eup %2109 }
 0x75b   : > { %v1105_v20 = vmul.f32 %v2110_v19, %v2102_v63  ;;  %v2096_v19 = vld [vmem:[%s2935_s22 + $0x28] sm:$0xff]  }
 0x75d   : > { %v1109_v21 = vpack.c.bf16 %v1105_v20, %v1105_v20 }
 0x75f   : > { %1893 = vmatmul.mubr.msk.bf16.vlgmr.msra.gmra.mrb[4].mxu1 %vm1064_vm8, %v1109_v21 }
 0x760   : > { %1903 = vmatpush3.bf16.msra.mxu1 %v1116_v22  ;;  %1904 = vmatprep.mubr.msk.bf16.mxu1 %vm2351_vm4, %v2350_v60 }
 0x761   : > { %1914 = vmatprep.subr.bf16.mxu1 %v2350_v60 }
 0x7c2   : > { %v1094_v23 = vpop.xlane.xlu1 %1093 }
 0x7c3   : > { %2111 = vrcp.f32 %v1094_v23 }
 0x7c6   : > { %v1097_v24 = vpop.xlane.xlu1 %1096 }
 0x7c7   : > { %2113 = vrcp.f32 %v1097_v24  ;;  %v1777_v24 = vld [vmem:[#allocation10] ss:$0 sm:$0xff] }
 0x7ca   : > { %v1100_v25 = vpop.xlane.xlu0 %1099 }
 0x7cb   : > { %2115 = vrcp.f32 %v1100_v25 }
 0x7cd   : > { %v2112_v26 = vpop.eup %2111 }
 0x7ce   : > { %v1106_v27 = vmul.f32 %v2112_v26, %v2104_v11  ;;  %v1778_v26 = vld [vmem:[#allocation11] ss:$0 sm:$0xff] }
 0x7d0   : > { %v1110_v28 = vpack.c.bf16 %v1106_v27, %v1106_v27 }
 0x7d1   : > { %v2114_v30 = vpop.eup %2113 }
 0x7d2   : > { %v1107_v31 = vmul.f32 %v2114_v30, %v2106_v13  ;;  %1899 = vmatmul.mubr.msk.bf16.vlgmr.msra.gmra.mrb[16].mxu0 %vm1064_vm8, %v1110_v28  ;;  %v2090_v13 = vld [vmem:[%s2934_s10 + $0x8] sm:$0xff]   ;;  %v2097_v30 = vld [vmem:[%s2935_s22 + $0x30] sm:$0xff]  }
 0x7d3   : > { %1909 = vmatpush3.bf16.msra.mxu0 %v1117_v29  ;;  %1910 = vmatprep.mubr.msk.bf16.mxu0 %vm2351_vm4, %v2350_v60 }
 0x7d4   : > { %v1111_v32 = vpack.c.bf16 %v1107_v31, %v1107_v31  ;;  %1922 = vmatprep.subr.bf16.mxu0 %v2350_v60  ;;  %v2098_v31 = vld [vmem:[%s2935_s22 + $0x38] sm:$0xff]  }
 0x7d5   : > { %v2116_v33 = vpop.eup %2115 }
 0x7d6   : > { %v1108_v34 = vmul.f32 %v2116_v33, %v2108_v15  ;;  %1905 = vmatmul.mubr.msk.bf16.vlgmr.msra.gmra.mrb[8].mxu1 %vm1064_vm8, %v1111_v32  ;;  %v2092_v15 = vld [vmem:[%s2935_s22 + $0x8] sm:$0xff]   ;;  %v1779_v32 = vld [vmem:[%s2936_s29] ss:$0 sm:$0xff]  ;;  %s2358_s29 = smov [#allocation13]  }
 0x7d7   : > { %1918 = vmatprep.mubr.msk.bf16.mxu1 %vm2351_vm4, %v2350_v60  ;;  %1915 = vmatpush3.bf16.msra.mxu1 %v2087_v41  ;;  %s2235_s26 = sshll.u32 %s2358_s29, 4  ;;  %s2236_s26 = int_to_ptr.vmem [resolvable:$false] %s2235_s26 }
 0x7d8   : > { %v1112_v35 = vpack.c.bf16 %v1108_v34, %v1108_v34  ;;  %1916 = vmatprep.subr.bf16.mxu1 %v2350_v60  ;;  %s2237_s25 = scalar_lea.vmem %s2236_s26, 256  ;;  %p2238_p5 = scmp.lt.s32.totalorder %s2816_s15, %s2236_s26 }
 0x7d9   : > { %p2239_p6 = scmp.lt.s32.totalorder %s2237_s25, %s2231_s13 }
 0x7da   : > { %1911 = vmatmul.mubr.msk.bf16.vlgmr.msra.gmra.mrb[20].mxu0 %vm1064_vm8, %v1112_v35 }
 0x7db   : > { %1926 = vmatprep.mubr.msk.bf16.mxu0 %vm2351_vm4, %v2350_v60  ;;  %1917 = vmatpush3.bf16.msra.mxu1 %v2088_v42  ;;  %p2240_p7 = por %p2239_p6, %p2238_p5 }
 0x7dc   : > { %1930 = vmatprep.subr.bf16.mxu1 %v2350_v60  ;;  %1923 = vmatpush3.bf16.msra.mxu0 %v2089_v52 }
 0x7dd   : > { %1924 = vmatprep.subr.bf16.mxu0 %v2350_v60  ;;  %p2241_p9 = pnand %p2240_p7, %p2234_p4 }
 0x7e0   : > { %1925 = vmatpush3.bf16.msra.mxu0 %v2090_v13 }
 0x832   : > { %v1155_v36 = vpop.f32.mrb[4].mxu1 }
 0x833   : > { %v1290_v37 = vpack.c.bf16 %v1155_v36, %v1155_v36  ;;  %v1894_v38 = vpop.f32.mrb[5].mxu1 }
 0x834   : > { %v1158_v39 = vpop.f32.mrb[6].mxu1 }
 0x835   : > { %1291 = vst.msk [vmem:[#allocation4] sm:$0xf] %vm838_vm6, %v1290_v37  ;;  %v1895_v40 = vpop.f32.mrb[7].mxu1 }
 0x8a5   : > { %v1198_v43 = vpop.f32.mrb[16].mxu0 }
 0x8a6   : > { %v1799_v44 = vpack.c.bf16 %v1198_v43, %v1198_v43  ;;  %v1900_v45 = vpop.f32.mrb[17].mxu0 }
 0x8a7   : > { %v1201_v46 = vpop.f32.mrb[18].mxu0 }
 0x8a8   : > { %1296 = vrot.lane.b32.xlu1 %v1799_v44, %s2355_s14  ;;  %v1901_v47 = vpop.f32.mrb[19].mxu0 }
 0x8a9   : > { %v1241_v48 = vpop.f32.mrb[8].mxu1 }
 0x8aa   : > { %v1800_v49 = vpack.c.bf16 %v1241_v48, %v1241_v48  ;;  %v1906_v50 = vpop.f32.mrb[9].mxu1 }
 0x8ab   : > { %v1244_v51 = vpop.f32.mrb[10].mxu1 }
 0x8ac   : > { %1305 = vrot.lane.b32.xlu0 %v1800_v49, %s2356_s21  ;;  %v1907_v53 = vpop.f32.mrb[11].mxu1 }
 0x8ad   : > { %v1284_v54 = vpop.f32.mrb[20].mxu0 }
 0x8ae   : > { %v1801_v55 = vpack.c.bf16 %v1284_v54, %v1284_v54  ;;  %v1912_v56 = vpop.f32.mrb[21].mxu0 }
 0x8af   : > { %v1287_v57 = vpop.f32.mrb[22].mxu0 }
 0x8b0   : > { %1314 = vrot.lane.b32.xlu1 %v1801_v55, %s2357_s11  ;;  %v1913_v58 = vpop.f32.mrb[23].mxu0  ;;  %s2937_s11 = sld [smem:[#allocation33_spill]] }
 0x91a   : > { %v1297_v59 = vpop.permute.xlu1 %1296 }
 0x91b   : > { %1300 = vst.msk [vmem:[#allocation4] sm:$0xf] %vm1299_vm9, %v1297_v59 }
 0x91e   : > { %v1306_v61 = vpop.permute.xlu0 %1305 }
 0x91f   : > { %1309 = vst.msk [vmem:[#allocation4] sm:$0xf] %vm1308_vm10, %v1306_v61 }
 0x922   : > { %v1315_v62 = vpop.permute.xlu1 %1314 }
 0x923   : > { %1318 = vst.msk [vmem:[#allocation4] sm:$0xf] %vm1317_vm11, %v1315_v62 }
 0x92a   : > { %v1327_v63 = vld [vmem:[#allocation4] sm:$0xf] }
 0x92b   : > { %1919 = vmatmul.mubr.msk.bf16.vlgmr.msra.gmra.mrb[12].mxu1 %vm747_vm3, %v1327_v63 }
 0x92c   : > { %1946 = vmatprep.mubr.msk.bf16.mxu1 %vm2351_vm4, %v2350_v60  ;;  %1931 = vmatpush3.bf16.msra.mxu1 %v2091_v14 }
 0x92d   : > { %1932 = vmatprep.subr.bf16.mxu1 %v2350_v60 }
 0x930   : > { %1933 = vmatpush3.bf16.msra.mxu1 %v2092_v15 }
 0x931   : > { %1934 = vmatprep.subr.bf16.mxu1 %v2350_v60 }
 0x934   : > { %1935 = vmatpush3.bf16.msra.mxu1 %v2093_v16 }
 0x935   : > { %1936 = vmatprep.subr.bf16.mxu1 %v2350_v60 }
 0x938   : > { %1937 = vmatpush3.bf16.msra.mxu1 %v2094_v17 }
 0x939   : > { %1938 = vmatprep.subr.bf16.mxu1 %v2350_v60 }
 0x93c   : > { %1939 = vmatpush3.bf16.msra.mxu1 %v2095_v18 }
 0x93d   : > { %1940 = vmatprep.subr.bf16.mxu1 %v2350_v60 }
 0x940   : > { %1941 = vmatpush3.bf16.msra.mxu1 %v2096_v19 }
 0x941   : > { %1942 = vmatprep.subr.bf16.mxu1 %v2350_v60 }
 0x944   : > { %1943 = vmatpush3.bf16.msra.mxu1 %v2097_v30 }
 0x945   : > { %1944 = vmatprep.subr.bf16.mxu1 %v2350_v60  ;;  %v1783_v60 = vld [vmem:[%s2937_s11] ss:$0 sm:$0xff] }
 0x948   : > { %1945 = vmatpush3.bf16.msra.mxu1 %v2098_v31 }
 0x9fe   : > { %v1381_v2 = vpop.f32.mrb[12].mxu1 }
 0x9ff   : > { %v2755_v3 = vadd.f32 %v1381_v2, %v1326_v1  ;;  %v1920_v4 = vpop.f32.mrb[13].mxu1 }
 0xa00   : > { %v1384_v5 = vpop.f32.mrb[14].mxu1 }
 0xa01   : > { %v1921_v6 = vpop.f32.mrb[15].mxu1  ;;  %v1390_v7 = vsel %vm747_vm3, %v2755_v3, 0.0 }
 0xa02   : > { %1391 = vadd.xlane.f32.xlu1 %v1390_v7 }
 0xa8f   : > { %v1392_v8 = vpop.xlane.xlu1 %1391 }
 0xa90   : > { %v1393_v9 = vmul.f32 0.03125, %v1392_v8 }
 0xa92   : > { %v1394_v10 = vsub.f32 %v2755_v3, %v1393_v9 }
 0xa94   : > { %v1395_v11 = vmul.f32 %v1394_v10, %v1394_v10 }
 0xa96   : > { %v1396_v12 = vsel %vm747_vm3, %v1395_v11, 0.0 }
 0xa97   : > { %1397 = vadd.xlane.f32.xlu0 %v1396_v12 }
 0xb24   : > { %v1398_v20 = vpop.xlane.xlu0 %1397 }
 0xb25   : > { %v1399_v21 = vmul.f32 0.03125, %v1398_v20 }
 0xb27   : > { %v1400_v22 = vadd.f32 1e-05, %v1399_v21 }
 0xb29   : > { %2117 = vrsqrt.f32 %v1400_v22 }
 0xb33   : > { %v2118_v23 = vpop.eup %2117 }
 0xb34   : > { %v1402_v25 = vmul.f32 %v2118_v23, %v1394_v10 }
 0xb36   : > { %v1409_v27 = vmul.f32 %v1777_v24, %v1402_v25 }
 0xb38   : > { %v1416_v28 = vadd.f32 %v1778_v26, %v1409_v27 }
 0xb3a   : > { %v1417_v29 = vpack.c.bf16 %v1416_v28, %v1416_v28 }
 0xb3c   : > { %1927 = vmatmul.mubr.msk.bf16.vlgmr.msra.gmra.mrb[24].mxu0 %vm747_vm3, %v1417_v29 }
 0xc0f   : > { %v1478_v33 = vpop.f32.mrb[24].mxu0 }
 0xc10   : > { %v1479_v34 = vadd.f32 %v1779_v32, %v1478_v33  ;;  %v1928_v35 = vpop.f32.mrb[25].mxu0 }
 0xc11   : > { %v1481_v36 = vpop.f32.mrb[26].mxu0 }
 0xc12   : > { %v1484_v37 = vmax.f32 %v1479_v34, 0.0  ;;  %v1929_v38 = vpop.f32.mrb[27].mxu0 }
 0xc14   : > { %v1485_v39 = vpack.c.bf16 %v1484_v37, %v1484_v37 }
 0xc16   : > { %1947 = vmatmul.mubr.bf16.vlgmr.msra.gmra.mrb[16].mxu1 %v1485_v39 }
 0xce9   : > { %v1591_v40 = vpop.f32.mrb[16].mxu1 }
 0xcea   : > { %v1592_v41 = vadd.f32 %v1783_v60, %v1591_v40  ;;  %v1948_v42 = vpop.f32.mrb[17].mxu1 }
 0xceb   : > { %v1594_v43 = vpop.f32.mrb[18].mxu1 }
 0xcec   : > { %v1597_v44 = vadd.f32 %v1592_v41, %v2755_v3  ;;  %v1949_v45 = vpop.f32.mrb[19].mxu1 }
 0xcee   : > { %1598 = vst.msk [vmem:[%s527_s12] sm:$0xff] %vm747_vm3, %v1597_v44 }
 0xcef   : > { %2244 = shalt.err (!%p2241_p9)
}
 0xcf0   : > { %s2245_s23 = scalar_lea.hbm %s2814_s17, 128  ;;  %s2249_s14 = scalar_lea.hbm %s2940_s24, 512 }
 0xcf1   : > { %p2246_p11 = scmp.ne.s32.totalorder %s2814_s17, %s2245_s23  ;;  %p2250_p8 = scmp.lt.u32.totalorder %s2814_s17, %s2940_s24 }
 0xcf2   : > { %p2251_p0 = scmp.lt.u32.totalorder %s2249_s14, %s2245_s23  ;;  %p2253_p10 = scmp.lt.u32.totalorder %s2245_s23, %s2814_s17 }
 0xcf3   : > { %p2247_p13 = pnand %p2246_p11, %p2941_p12 }
 0xcf4   : > { %p2252_p2 = por %p2251_p0, %p2250_p8 }
 0xcf5   : > { %p2248_p3 = pneg %p2247_p13 }
 0xcf6   : > { %p2254_p1 = por %p2253_p10, %p2252_p2 }
 0xcf8   : > { %p2255_p4 = pnand %p2254_p1, %p2248_p3 }
 0xcfa   : > { %2258 = shalt.err (!%p2255_p4)
}
 0xcfb   : > { %1966 = dma.vmem_to_hbm [thread:$0]  (%p2941_p12), %s2816_s15, 128, %s2814_s17, %s1600_s16  }
 0xcfc PF: > { %s2942_s3 = sld [smem:[#allocation22_spill]]  ;;  %s2943_s7 = sld [smem:[#allocation18_spill]] }
 0xcfd   : > { %s2944_s20 = sld [smem:[#allocation26_spill]] }
 0xd02   : > { %p1993_p5 = scmp.ge.s32.totalorder %s2942_s3, 2  ;;  %s1627_s19 = sand.u32 1, %s2943_s7  }
 0xd03   : > { %p2945_p6 = scmp.ne.s32.totalorder %s2944_s20, 0  ;;  %s1628_s13 = scalar_lea.sflag [#allocation7], %s1627_s19 }
 0xd05   : > { %p1982_p7 = pnand %p1993_p5, %p2945_p6 }
 0xd07   : > { %2304 = dma.done.wait (!%p1982_p7), %s1628_s13, 128  }
 0xd08   : > { %2306 = vsyncadd (!%p1982_p7), %s1628_s13, 4294967168  ;;  %s30_s20 = sadd.s32 1, %s2942_s3   ;;  %s2946_s26 = sld [smem:[#allocation19_spill]] }
 0xd09   : > { %p27_p9 = scmp.ge.s32.totalorder %s30_s20, 6   ;;  %s2947_s15 = sld [smem:[#allocation27_spill]] }
 0xd0a   : > { %s2948_s16 = sld [smem:[#allocation20_spill]]  ;;  %s2949_s17 = sld [smem:[#allocation21_spill]] }
 0xd0b   : > { %s2950_s18 = sld [smem:[#allocation23_spill]]  ;;  %s2951_s19 = sld [smem:[#allocation25_spill]] }
 0xd0c   : > { %s2952_s29 = smov %s2313_s30  ;;  %29 = sbr.rel (!%p27_p9) target bundleno = 16 (0x10), region = 144 }
 0xd0e   : > { %s2953_s30 = smov %s2946_s26 }
 0xd13   :  { %1633 = vsyncpa [#allocation6], 1 }
 0xd14   :  { %1635 = vsyncpa [#allocation6 + $0x1], 1 }
 0xd15   :  { %1636 = vsyncpa [#allocation9], 1 }
 0xd16   :  { %1637 = vsyncpa [#allocation12], 1 }
 0xd17   :  { %1638 = vsyncpa [#allocation7], 1 }
 0xd18   :  { %1640 = vsyncpa [#allocation7 + $0x1], 1 }

</bundles_post_ra>
